<compile_context>
chip_gen: v5e
topology: v5e:2x2
jax: 0.10.0
libtpu: 0.0.40
codegen_flags: <defaults>
</compile_context>

<pallas_src>
import functools

import numpy as np
import jax
import jax.numpy as jnp
from jax.experimental import pallas as pl
from jax.experimental.pallas import tpu as pltpu

EPS = 1e-8
NEG_SLOPE = 0.2
SEG_LANES = 128            # lane-dense seg-head width (real cond_dim channels sliced in wrapper)
MXU_DTYPE = jnp.bfloat16   # matmul operand dtype; accumulation stays f32
PAD_ROWS = 8               # zero guard rows above/below the flattened activation scratch


# ------------------------------ kernel helpers ------------------------------ #
def _pixelnorm(x):
    # PixelNorm over the channel (last / lane) dimension.
    return x * jax.lax.rsqrt(jnp.mean(x * x, axis=-1, keepdims=True) + EPS)


def _lrelu(x):
    return jnp.where(x >= 0, x, NEG_SLOPE * x)


# --------------------------------- kernel ----------------------------------- #
def _fused_block0_kernel(z_ref, mask_ref, w1_ref, b1_ref, w2_ref, b2_ref,
                         ws_ref, bs_ref, seg_ref, xpad_ref, *, H, W):
    """Whole initial ProGAN block + seg head; all intermediates resident in VMEM.

    Activation row layout: r = b*H*W + h*W + w, channels on the lane axis.
    """
    B = z_ref.shape[0]
    HW = H * W
    BHW = B * HW
    C = w2_ref.shape[1]

    # Zero the padded activation scratch (guard rows must be 0 for the conv reads).
    xpad_ref[...] = jnp.zeros_like(xpad_ref)

    # -- stage 1: PixelNorm over the latent/cond channels ------------------------
    z = z_ref[...].astype(jnp.float32)
    zn = _pixelnorm(z).astype(MXU_DTYPE)                          # (B, K)

    # -- stage 2: fc1 per spatial position + LeakyReLU + PixelNorm ---------------
    # w1 is pre-arranged as (HW, K, C): one (K, C) slab per output pixel, so the
    # result is produced directly in channels-last row layout (no transpose).
    for p in range(HW):
        y = jnp.dot(zn, w1_ref[p], preferred_element_type=jnp.float32)   # (B, C)
        y = y + b1_ref[pl.ds(p, 1), :]
        y = _pixelnorm(_lrelu(y))
        for b in range(B):
            xpad_ref[pl.ds(PAD_ROWS + b * HW + p, 1), :] = y[b:b + 1, :]

    # -- stage 3: 3x3 conv2 (pad=1) as 9 accumulated MXU dots --------------------
    # Neighbour (h+dy-1, w+dx-1) of flattened row r is row r + (dy-1)*W + (dx-1);
    # reads come from the zero-padded scratch, and border / batch wrap-around is
    # removed by precomputed 0/1 tap masks.
    acc = jnp.zeros((BHW, C), jnp.float32) + b2_ref[...]
    for dy in range(3):
        for dx in range(3):
            t = dy * 3 + dx
            d = (dy - 1) * W + (dx - 1)
            nbr = xpad_ref[pl.ds(PAD_ROWS + d, BHW), :]           # (BHW, C)
            if d != 0:                                            # centre tap is always valid
                nbr = nbr * mask_ref[t]                           # (BHW, 1) broadcast
            acc = acc + jnp.dot(nbr.astype(MXU_DTYPE), w2_ref[t],
                                preferred_element_type=jnp.float32)
    x2 = _pixelnorm(_lrelu(acc))                                  # (BHW, C)

    # -- stage 4: seg head (equalized 1x1 conv), lane-padded to 128 ---------------
    seg = jnp.dot(x2.astype(MXU_DTYPE), ws_ref[...],
                  preferred_element_type=jnp.float32) + bs_ref[...]
    seg_ref[...] = seg


# ------------------------------- JAX wrapper --------------------------------- #
def _full_block_spec(shape):
    nd = len(shape)
    return pl.BlockSpec(shape, lambda i, _nd=nd: (0,) * _nd)


def _conv_tap_masks(B, H, W):
    """0/1 validity masks for the 9 conv taps in flattened-row layout."""
    HW = H * W
    r = np.arange(B * HW)
    h = (r % HW) // W
    w = r % W
    m = np.zeros((9, B * HW, 1), np.float32)
    for dy in range(3):
        for dx in range(3):
            valid = ((h + dy - 1 >= 0) & (h + dy - 1 < H) &
                     (w + dx - 1 >= 0) & (w + dx - 1 < W))
            m[dy * 3 + dx, :, 0] = valid.astype(np.float32)
    return jnp.asarray(m)


def fused_block0_forward(blk, x):
    """One pallas_call for the whole initial block + seg head.

    At res=4 everything (weights + activations, a few tens of KiB) fits in a single
    VMEM-resident program, so grid=(1,).
    # TODO(synk): for large resolutions, tile the B*H*W row axis over a 'parallel'
    # grid dimension (weights pinned via index_map -> zeros), sized for ~32 MiB of
    # scoped VMEM so the same config also fits v7x (64 MiB VMEM, 2 TensorCores).
    """
    B = x.shape[0]
    H, W, C = blk["h0"], blk["w0"], blk["out_dim"]
    BHW = B * H * W
    w1, b1 = blk["fc1"]
    w2, b2 = blk["conv2"]
    ws, bs = blk["to_seg"]
    seg_lanes = ws.shape[1]
    masks = _conv_tap_masks(B, H, W)

    inputs = (x.astype(jnp.float32), masks, w1, b1, w2, b2, ws, bs)
    kernel = functools.partial(_fused_block0_kernel, H=H, W=W)
    return pl.pallas_call(
        kernel,
        out_shape=jax.ShapeDtypeStruct((BHW, seg_lanes), jnp.float32),
        grid=(1,),
        in_specs=[_full_block_spec(a.shape) for a in inputs],
        out_specs=_full_block_spec((BHW, seg_lanes)),
        scratch_shapes=[pltpu.VMEM((BHW + 2 * PAD_ROWS, C), jnp.float32)],
        compiler_params=pltpu.CompilerParams(dimension_semantics=("arbitrary",)),
    )(*inputs)


# ---------------------------- parameter setup -------------------------------- #
def eq_linear_fc1(key, in_f, C, H, W, gain):
    # EqualizedLinear(in_f, C*H*W): runtime gain/sqrt(fan_in) folded into init.
    # Columns re-ordered from the PyTorch view(B, C, H, W) flat order (o = c*H*W + p)
    # into a per-pixel (H*W, in_f, C) slab layout -> kernel writes NHWC rows directly.
    w = jax.random.normal(key, (in_f, C * H * W), jnp.float32) * (gain / np.sqrt(in_f))
    w = w.reshape(in_f, C, H * W).transpose(2, 0, 1)              # (HW, in_f, C)
    b = jnp.zeros((H * W, C), jnp.float32)                        # zero-init bias, same layout
    return w.astype(MXU_DTYPE), b


def eq_conv3x3(key, cin, cout, gain=np.sqrt(2)):
    # EqualizedConv2d 3x3 pad=1; stored as 9 (Cin, Cout) taps, tap index = dy*3 + dx.
    w = jax.random.normal(key, (3, 3, cin, cout), jnp.float32) * (gain / np.sqrt(cin * 9))
    b = jnp.zeros((1, cout), jnp.float32)
    return w.reshape(9, cin, cout).astype(MXU_DTYPE), b


def eq_conv1x1_seg(key, cin, cout, gain=np.sqrt(2)):
    # TODO(synk): modules.CondJoint source is not provided; approximate its mask()
    # with an equalized 1x1 conv producing `cond_dim` logits (lane-padded to 128).
    lanes = int(np.ceil(cout / SEG_LANES)) * SEG_LANES
    w = jax.random.normal(key, (cin, cout), jnp.float32) * (gain / np.sqrt(cin))
    w = jnp.pad(w, ((0, 0), (0, lanes - cout)))
    b = jnp.zeros((1, lanes), jnp.float32)
    return w.astype(MXU_DTYPE), b


def feature_dims_for_block(i, cond_dim, latent_dim, max_hidden_dim):
    if i == 0:
        in_dim = cond_dim + latent_dim
    else:
        in_dim = min(max_hidden_dim, 2 ** (13 - i))
    out_dim = min(max_hidden_dim, 2 ** (13 - i - 1))
    return in_dim, out_dim


def init_generator_params(key, opt):
    max_scale = int(np.log2(opt["max_dim"])) - 1
    params = []
    for i in range(max_scale):
        in_dim, out_dim = feature_dims_for_block(
            i, opt["cond_dim"], opt["latent_dim"], opt["max_hidden_dim"])
        key, k1, k2, k3 = jax.random.split(key, 4)
        blk = {"in_dim": in_dim, "out_dim": out_dim,
               "initial": i == 0, "final": i == max_scale - 1}
        if i == 0:
            blk["h0"] = 4
            blk["w0"] = int(opt["aspect_ratio"] * 4)
            blk["fc1"] = eq_linear_fc1(k1, in_dim, out_dim, blk["h0"], blk["w0"],
                                       gain=np.sqrt(2) / 4)
        else:
            blk["conv1"] = eq_conv3x3(k1, in_dim, out_dim)   # unused at scale=1
        blk["conv2"] = eq_conv3x3(k2, out_dim, out_dim)
        blk["to_seg"] = eq_conv1x1_seg(k3, out_dim, opt["cond_dim"])
        params.append(blk)
    return params


# ------------------------------ model forward -------------------------------- #
def progan_generator_forward(params, opt, scale, z, cond):
    # get_input_vector
    x = z
    if opt["cond_seg"] in ("semantic", "panoptic"):
        x = jnp.concatenate([x, cond["sem_cond"]], axis=1)
    if opt["cond_seg"] in ("instance", "panoptic"):
        x = jnp.concatenate([x, cond["ins_cond"]], axis=1)

    segs = []
    for _ in range(scale - 1):
        # TODO(synk): intermediate blocks need modules.CondJoint (to_joint=True); source not provided.
        raise NotImplementedError("scale > 1 path requires CondJoint, source not provided")

    blk = params[scale - 1]
    if not blk["initial"]:
        raise NotImplementedError("fused kernel implemented for the initial (res=4) block only")

    B = x.shape[0]
    H, W, S = blk["h0"], blk["w0"], opt["cond_dim"]
    seg_rows = fused_block0_forward(blk, x)                           # (B*H*W, 128) lane-dense
    seg = seg_rows[:, :S].reshape(B, H, W, S).transpose(0, 3, 1, 2)   # -> NCHW
    segs.append({"sem_seg": seg})
    return segs


# ----------------------------------- main ------------------------------------ #
if __name__ == "__main__":
    opt = dict(
        cond_dim=8,
        latent_dim=16,
        max_dim=8,           # -> max_scale = 2 (blocks built as in __init__)
        max_hidden_dim=32,
        aspect_ratio=1.0,
        cond_seg="semantic",
        joints_mul=1,
    )
    key = jax.random.PRNGKey(0)
    pkey, zkey, ckey = jax.random.split(key, 3)

    params = init_generator_params(pkey, opt)

    B = 2
    z = jax.random.normal(zkey, (B, opt["latent_dim"]), jnp.float32)
    sem_cond = jax.random.normal(ckey, (B, opt["cond_dim"]), jnp.float32)
    cond = {"sem_cond": sem_cond}

    scale = 1  # module default (res = 4)
    segs = progan_generator_forward(params, opt, scale, z, cond)

    seg = segs[-1]["sem_seg"]
    jax.block_until_ready(seg)
    assert seg.shape == (B, opt["cond_dim"], 4, 4), seg.shape
    assert bool(jnp.all(jnp.isfinite(seg)))
    print("KERNEL_OK")
</pallas_src>

<mosaic_0001>
module attributes {stable_mosaic.version = 11 : i64} {
  func.func @_fused_block0_kernel(%arg0: i32, %arg1: memref<2x24xf32, #tpu.memory_space<vmem>>, %arg2: memref<9x32x1xf32, #tpu.memory_space<vmem>>, %arg3: memref<16x24x32xbf16, #tpu.memory_space<vmem>>, %arg4: memref<16x32xf32, #tpu.memory_space<vmem>>, %arg5: memref<9x32x32xbf16, #tpu.memory_space<vmem>>, %arg6: memref<1x32xf32, #tpu.memory_space<vmem>>, %arg7: memref<32x128xbf16, #tpu.memory_space<vmem>>, %arg8: memref<1x128xf32, #tpu.memory_space<vmem>>, %arg9: memref<32x128xf32, #tpu.memory_space<vmem>>, %arg10: memref<48x32xf32, #tpu.memory_space<vmem>>) attributes {dimension_semantics = [#tpu.dimension_semantics<arbitrary>], iteration_bounds = array<i64: 1>, scalar_prefetch = 0 : i64, scratch_operands = 1 : i64, tpu.core_type = #tpu.core_type<tc>, window_params = [{pipeline_mode = #tpu.pipeline_mode<synchronous>, transform_indices = @transform_0, window_bounds = array<i64: 2, 24>}, {pipeline_mode = #tpu.pipeline_mode<synchronous>, transform_indices = @transform_1, window_bounds = array<i64: 9, 32, 1>}, {pipeline_mode = #tpu.pipeline_mode<synchronous>, transform_indices = @transform_2, window_bounds = array<i64: 16, 24, 32>}, {pipeline_mode = #tpu.pipeline_mode<synchronous>, transform_indices = @transform_3, window_bounds = array<i64: 16, 32>}, {pipeline_mode = #tpu.pipeline_mode<synchronous>, transform_indices = @transform_4, window_bounds = array<i64: 9, 32, 32>}, {pipeline_mode = #tpu.pipeline_mode<synchronous>, transform_indices = @transform_5, window_bounds = array<i64: 1, 32>}, {pipeline_mode = #tpu.pipeline_mode<synchronous>, transform_indices = @transform_6, window_bounds = array<i64: 32, 128>}, {pipeline_mode = #tpu.pipeline_mode<synchronous>, transform_indices = @transform_7, window_bounds = array<i64: 1, 128>}, {pipeline_mode = #tpu.pipeline_mode<synchronous>, transform_indices = @transform_8, window_bounds = array<i64: 32, 128>}]} {
    %cst = arith.constant 0.000000e+00 : f32
    %0 = vector.broadcast %cst : f32 to vector<48x32xf32>
    %c0 = arith.constant 0 : index
    %c0_0 = arith.constant 0 : index
    %1 = vector.load %arg10[%c0, %c0_0] : memref<48x32xf32, #tpu.memory_space<vmem>>, vector<48x32xf32>
    tpu.vector_store %arg10[%c0, %c0_0], %0 {strides = array<i32>} : memref<48x32xf32, #tpu.memory_space<vmem>>, vector<48x32xf32>,
    %c0_1 = arith.constant 0 : index
    %c0_2 = arith.constant 0 : index
    %2 = vector.load %arg1[%c0_1, %c0_2] : memref<2x24xf32, #tpu.memory_space<vmem>>, vector<2x24xf32>
    %3 = arith.mulf %2, %2 : vector<2x24xf32>
    %cst_3 = arith.constant dense<0.000000e+00> : vector<2xf32>
    %4 = vector.multi_reduction <add>, %3, %cst_3 [1] : vector<2x24xf32> to vector<2xf32>
    %5 = vector.shape_cast %4 : vector<2xf32> to vector<2x1xf32>
    %cst_4 = arith.constant 2.400000e+01 : f32
    %6 = vector.broadcast %cst_4 : f32 to vector<2x1xf32>
    %7 = arith.divf %5, %6 : vector<2x1xf32>
    %cst_5 = arith.constant 9.99999993E-9 : f32
    %8 = vector.broadcast %cst_5 : f32 to vector<2x1xf32>
    %9 = arith.addf %7, %8 : vector<2x1xf32>
    %10 = math.rsqrt %9 : vector<2x1xf32>
    %11 = vector.broadcast %10 : vector<2x1xf32> to vector<2x24xf32>
    %12 = arith.mulf %2, %11 : vector<2x24xf32>
    %13 = arith.truncf %12 : vector<2x24xf32> to vector<2x24xbf16>
    %c0_6 = arith.constant 0 : index
    %c0_7 = arith.constant 0 : index
    %c0_8 = arith.constant 0 : index
    %14 = vector.load %arg3[%c0_6, %c0_7, %c0_8] : memref<16x24x32xbf16, #tpu.memory_space<vmem>>, vector<1x24x32xbf16>
    %15 = vector.shape_cast %14 : vector<1x24x32xbf16> to vector<24x32xbf16>
    %cst_9 = arith.constant dense<0.000000e+00> : vector<2x32xf32>
    %16 = tpu.matmul %13, %15, %cst_9 {dimension_numbers = #tpu.dot_dimension_numbers<[1], [0], [0], [1], [0, 0, 1, 1], [], []>} : vector<2x24xbf16>, vector<24x32xbf16>, vector<2x32xf32> -> vector<2x32xf32>
    %c0_10 = arith.constant 0 : index
    %c0_11 = arith.constant 0 : index
    %17 = vector.load %arg4[%c0_10, %c0_11] : memref<16x32xf32, #tpu.memory_space<vmem>>, vector<1x32xf32>
    %18 = vector.broadcast %17 : vector<1x32xf32> to vector<2x32xf32>
    %19 = arith.addf %16, %18 : vector<2x32xf32>
    %cst_12 = arith.constant 0.000000e+00 : f32
    %20 = vector.broadcast %cst_12 : f32 to vector<2x32xf32>
    %21 = arith.cmpf oge, %19, %20 : vector<2x32xf32>
    %cst_13 = arith.constant 2.000000e-01 : f32
    %22 = vector.broadcast %cst_13 : f32 to vector<2x32xf32>
    %23 = arith.mulf %22, %19 : vector<2x32xf32>
    %24 = arith.select %21, %19, %23 : vector<2x32xi1>, vector<2x32xf32>
    %25 = arith.mulf %24, %24 : vector<2x32xf32>
    %cst_14 = arith.constant dense<0.000000e+00> : vector<2xf32>
    %26 = vector.multi_reduction <add>, %25, %cst_14 [1] : vector<2x32xf32> to vector<2xf32>
    %27 = vector.shape_cast %26 : vector<2xf32> to vector<2x1xf32>
    %cst_15 = arith.constant 3.200000e+01 : f32
    %28 = vector.broadcast %cst_15 : f32 to vector<2x1xf32>
    %29 = arith.divf %27, %28 : vector<2x1xf32>
    %cst_16 = arith.constant 9.99999993E-9 : f32
    %30 = vector.broadcast %cst_16 : f32 to vector<2x1xf32>
    %31 = arith.addf %29, %30 : vector<2x1xf32>
    %32 = math.rsqrt %31 : vector<2x1xf32>
    %33 = vector.broadcast %32 : vector<2x1xf32> to vector<2x32xf32>
    %34 = arith.mulf %24, %33 : vector<2x32xf32>
    %35 = vector.extract_strided_slice %34 {offsets = [0, 0], sizes = [1, 32], strides = [1, 1]} : vector<2x32xf32> to vector<1x32xf32>
    %c8 = arith.constant 8 : index
    %c0_17 = arith.constant 0 : index
    %36 = vector.load %arg10[%c8, %c0_17] : memref<48x32xf32, #tpu.memory_space<vmem>>, vector<1x32xf32>
    tpu.vector_store %arg10[%c8, %c0_17], %35 {strides = array<i32>} : memref<48x32xf32, #tpu.memory_space<vmem>>, vector<1x32xf32>,
    %37 = vector.extract_strided_slice %34 {offsets = [1, 0], sizes = [1, 32], strides = [1, 1]} : vector<2x32xf32> to vector<1x32xf32>
    %c24 = arith.constant 24 : index
    %c0_18 = arith.constant 0 : index
    %38 = vector.load %arg10[%c24, %c0_18] : memref<48x32xf32, #tpu.memory_space<vmem>>, vector<1x32xf32>
    tpu.vector_store %arg10[%c24, %c0_18], %37 {strides = array<i32>} : memref<48x32xf32, #tpu.memory_space<vmem>>, vector<1x32xf32>,
    %c1 = arith.constant 1 : index
    %c0_19 = arith.constant 0 : index
    %c0_20 = arith.constant 0 : index
    %39 = vector.load %arg3[%c1, %c0_19, %c0_20] : memref<16x24x32xbf16, #tpu.memory_space<vmem>>, vector<1x24x32xbf16>
    %40 = vector.shape_cast %39 : vector<1x24x32xbf16> to vector<24x32xbf16>
    %cst_21 = arith.constant dense<0.000000e+00> : vector<2x32xf32>
    %41 = tpu.matmul %13, %40, %cst_21 {dimension_numbers = #tpu.dot_dimension_numbers<[1], [0], [0], [1], [0, 0, 1, 1], [], []>} : vector<2x24xbf16>, vector<24x32xbf16>, vector<2x32xf32> -> vector<2x32xf32>
    %c1_22 = arith.constant 1 : index
    %c0_23 = arith.constant 0 : index
    %42 = vector.load %arg4[%c1_22, %c0_23] : memref<16x32xf32, #tpu.memory_space<vmem>>, vector<1x32xf32>
    %43 = vector.broadcast %42 : vector<1x32xf32> to vector<2x32xf32>
    %44 = arith.addf %41, %43 : vector<2x32xf32>
    %cst_24 = arith.constant 0.000000e+00 : f32
    %45 = vector.broadcast %cst_24 : f32 to vector<2x32xf32>
    %46 = arith.cmpf oge, %44, %45 : vector<2x32xf32>
    %cst_25 = arith.constant 2.000000e-01 : f32
    %47 = vector.broadcast %cst_25 : f32 to vector<2x32xf32>
    %48 = arith.mulf %47, %44 : vector<2x32xf32>
    %49 = arith.select %46, %44, %48 : vector<2x32xi1>, vector<2x32xf32>
    %50 = arith.mulf %49, %49 : vector<2x32xf32>
    %cst_26 = arith.constant dense<0.000000e+00> : vector<2xf32>
    %51 = vector.multi_reduction <add>, %50, %cst_26 [1] : vector<2x32xf32> to vector<2xf32>
    %52 = vector.shape_cast %51 : vector<2xf32> to vector<2x1xf32>
    %cst_27 = arith.constant 3.200000e+01 : f32
    %53 = vector.broadcast %cst_27 : f32 to vector<2x1xf32>
    %54 = arith.divf %52, %53 : vector<2x1xf32>
    %cst_28 = arith.constant 9.99999993E-9 : f32
    %55 = vector.broadcast %cst_28 : f32 to vector<2x1xf32>
    %56 = arith.addf %54, %55 : vector<2x1xf32>
    %57 = math.rsqrt %56 : vector<2x1xf32>
    %58 = vector.broadcast %57 : vector<2x1xf32> to vector<2x32xf32>
    %59 = arith.mulf %49, %58 : vector<2x32xf32>
    %60 = vector.extract_strided_slice %59 {offsets = [0, 0], sizes = [1, 32], strides = [1, 1]} : vector<2x32xf32> to vector<1x32xf32>
    %c9 = arith.constant 9 : index
    %c0_29 = arith.constant 0 : index
    %61 = vector.load %arg10[%c9, %c0_29] : memref<48x32xf32, #tpu.memory_space<vmem>>, vector<1x32xf32>
    tpu.vector_store %arg10[%c9, %c0_29], %60 {strides = array<i32>} : memref<48x32xf32, #tpu.memory_space<vmem>>, vector<1x32xf32>,
    %62 = vector.extract_strided_slice %59 {offsets = [1, 0], sizes = [1, 32], strides = [1, 1]} : vector<2x32xf32> to vector<1x32xf32>
    %c25 = arith.constant 25 : index
    %c0_30 = arith.constant 0 : index
    %63 = vector.load %arg10[%c25, %c0_30] : memref<48x32xf32, #tpu.memory_space<vmem>>, vector<1x32xf32>
    tpu.vector_store %arg10[%c25, %c0_30], %62 {strides = array<i32>} : memref<48x32xf32, #tpu.memory_space<vmem>>, vector<1x32xf32>,
    %c2 = arith.constant 2 : index
    %c0_31 = arith.constant 0 : index
    %c0_32 = arith.constant 0 : index
    %64 = vector.load %arg3[%c2, %c0_31, %c0_32] : memref<16x24x32xbf16, #tpu.memory_space<vmem>>, vector<1x24x32xbf16>
    %65 = vector.shape_cast %64 : vector<1x24x32xbf16> to vector<24x32xbf16>
    %cst_33 = arith.constant dense<0.000000e+00> : vector<2x32xf32>
    %66 = tpu.matmul %13, %65, %cst_33 {dimension_numbers = #tpu.dot_dimension_numbers<[1], [0], [0], [1], [0, 0, 1, 1], [], []>} : vector<2x24xbf16>, vector<24x32xbf16>, vector<2x32xf32> -> vector<2x32xf32>
    %c2_34 = arith.constant 2 : index
    %c0_35 = arith.constant 0 : index
    %67 = vector.load %arg4[%c2_34, %c0_35] : memref<16x32xf32, #tpu.memory_space<vmem>>, vector<1x32xf32>
    %68 = vector.broadcast %67 : vector<1x32xf32> to vector<2x32xf32>
    %69 = arith.addf %66, %68 : vector<2x32xf32>
    %cst_36 = arith.constant 0.000000e+00 : f32
    %70 = vector.broadcast %cst_36 : f32 to vector<2x32xf32>
    %71 = arith.cmpf oge, %69, %70 : vector<2x32xf32>
    %cst_37 = arith.constant 2.000000e-01 : f32
    %72 = vector.broadcast %cst_37 : f32 to vector<2x32xf32>
    %73 = arith.mulf %72, %69 : vector<2x32xf32>
    %74 = arith.select %71, %69, %73 : vector<2x32xi1>, vector<2x32xf32>
    %75 = arith.mulf %74, %74 : vector<2x32xf32>
    %cst_38 = arith.constant dense<0.000000e+00> : vector<2xf32>
    %76 = vector.multi_reduction <add>, %75, %cst_38 [1] : vector<2x32xf32> to vector<2xf32>
    %77 = vector.shape_cast %76 : vector<2xf32> to vector<2x1xf32>
    %cst_39 = arith.constant 3.200000e+01 : f32
    %78 = vector.broadcast %cst_39 : f32 to vector<2x1xf32>
    %79 = arith.divf %77, %78 : vector<2x1xf32>
    %cst_40 = arith.constant 9.99999993E-9 : f32
    %80 = vector.broadcast %cst_40 : f32 to vector<2x1xf32>
    %81 = arith.addf %79, %80 : vector<2x1xf32>
    %82 = math.rsqrt %81 : vector<2x1xf32>
    %83 = vector.broadcast %82 : vector<2x1xf32> to vector<2x32xf32>
    %84 = arith.mulf %74, %83 : vector<2x32xf32>
    %85 = vector.extract_strided_slice %84 {offsets = [0, 0], sizes = [1, 32], strides = [1, 1]} : vector<2x32xf32> to vector<1x32xf32>
    %c10 = arith.constant 10 : index
    %c0_41 = arith.constant 0 : index
    %86 = vector.load %arg10[%c10, %c0_41] : memref<48x32xf32, #tpu.memory_space<vmem>>, vector<1x32xf32>
    tpu.vector_store %arg10[%c10, %c0_41], %85 {strides = array<i32>} : memref<48x32xf32, #tpu.memory_space<vmem>>, vector<1x32xf32>,
    %87 = vector.extract_strided_slice %84 {offsets = [1, 0], sizes = [1, 32], strides = [1, 1]} : vector<2x32xf32> to vector<1x32xf32>
    %c26 = arith.constant 26 : index
    %c0_42 = arith.constant 0 : index
    %88 = vector.load %arg10[%c26, %c0_42] : memref<48x32xf32, #tpu.memory_space<vmem>>, vector<1x32xf32>
    tpu.vector_store %arg10[%c26, %c0_42], %87 {strides = array<i32>} : memref<48x32xf32, #tpu.memory_space<vmem>>, vector<1x32xf32>,
    %c3 = arith.constant 3 : index
    %c0_43 = arith.constant 0 : index
    %c0_44 = arith.constant 0 : index
    %89 = vector.load %arg3[%c3, %c0_43, %c0_44] : memref<16x24x32xbf16, #tpu.memory_space<vmem>>, vector<1x24x32xbf16>
    %90 = vector.shape_cast %89 : vector<1x24x32xbf16> to vector<24x32xbf16>
    %cst_45 = arith.constant dense<0.000000e+00> : vector<2x32xf32>
    %91 = tpu.matmul %13, %90, %cst_45 {dimension_numbers = #tpu.dot_dimension_numbers<[1], [0], [0], [1], [0, 0, 1, 1], [], []>} : vector<2x24xbf16>, vector<24x32xbf16>, vector<2x32xf32> -> vector<2x32xf32>
    %c3_46 = arith.constant 3 : index
    %c0_47 = arith.constant 0 : index
    %92 = vector.load %arg4[%c3_46, %c0_47] : memref<16x32xf32, #tpu.memory_space<vmem>>, vector<1x32xf32>
    %93 = vector.broadcast %92 : vector<1x32xf32> to vector<2x32xf32>
    %94 = arith.addf %91, %93 : vector<2x32xf32>
    %cst_48 = arith.constant 0.000000e+00 : f32
    %95 = vector.broadcast %cst_48 : f32 to vector<2x32xf32>
    %96 = arith.cmpf oge, %94, %95 : vector<2x32xf32>
    %cst_49 = arith.constant 2.000000e-01 : f32
    %97 = vector.broadcast %cst_49 : f32 to vector<2x32xf32>
    %98 = arith.mulf %97, %94 : vector<2x32xf32>
    %99 = arith.select %96, %94, %98 : vector<2x32xi1>, vector<2x32xf32>
    %100 = arith.mulf %99, %99 : vector<2x32xf32>
    %cst_50 = arith.constant dense<0.000000e+00> : vector<2xf32>
    %101 = vector.multi_reduction <add>, %100, %cst_50 [1] : vector<2x32xf32> to vector<2xf32>
    %102 = vector.shape_cast %101 : vector<2xf32> to vector<2x1xf32>
    %cst_51 = arith.constant 3.200000e+01 : f32
    %103 = vector.broadcast %cst_51 : f32 to vector<2x1xf32>
    %104 = arith.divf %102, %103 : vector<2x1xf32>
    %cst_52 = arith.constant 9.99999993E-9 : f32
    %105 = vector.broadcast %cst_52 : f32 to vector<2x1xf32>
    %106 = arith.addf %104, %105 : vector<2x1xf32>
    %107 = math.rsqrt %106 : vector<2x1xf32>
    %108 = vector.broadcast %107 : vector<2x1xf32> to vector<2x32xf32>
    %109 = arith.mulf %99, %108 : vector<2x32xf32>
    %110 = vector.extract_strided_slice %109 {offsets = [0, 0], sizes = [1, 32], strides = [1, 1]} : vector<2x32xf32> to vector<1x32xf32>
    %c11 = arith.constant 11 : index
    %c0_53 = arith.constant 0 : index
    %111 = vector.load %arg10[%c11, %c0_53] : memref<48x32xf32, #tpu.memory_space<vmem>>, vector<1x32xf32>
    tpu.vector_store %arg10[%c11, %c0_53], %110 {strides = array<i32>} : memref<48x32xf32, #tpu.memory_space<vmem>>, vector<1x32xf32>,
    %112 = vector.extract_strided_slice %109 {offsets = [1, 0], sizes = [1, 32], strides = [1, 1]} : vector<2x32xf32> to vector<1x32xf32>
    %c27 = arith.constant 27 : index
    %c0_54 = arith.constant 0 : index
    %113 = vector.load %arg10[%c27, %c0_54] : memref<48x32xf32, #tpu.memory_space<vmem>>, vector<1x32xf32>
    tpu.vector_store %arg10[%c27, %c0_54], %112 {strides = array<i32>} : memref<48x32xf32, #tpu.memory_space<vmem>>, vector<1x32xf32>,
    %c4 = arith.constant 4 : index
    %c0_55 = arith.constant 0 : index
    %c0_56 = arith.constant 0 : index
    %114 = vector.load %arg3[%c4, %c0_55, %c0_56] : memref<16x24x32xbf16, #tpu.memory_space<vmem>>, vector<1x24x32xbf16>
    %115 = vector.shape_cast %114 : vector<1x24x32xbf16> to vector<24x32xbf16>
    %cst_57 = arith.constant dense<0.000000e+00> : vector<2x32xf32>
    %116 = tpu.matmul %13, %115, %cst_57 {dimension_numbers = #tpu.dot_dimension_numbers<[1], [0], [0], [1], [0, 0, 1, 1], [], []>} : vector<2x24xbf16>, vector<24x32xbf16>, vector<2x32xf32> -> vector<2x32xf32>
    %c4_58 = arith.constant 4 : index
    %c0_59 = arith.constant 0 : index
    %117 = vector.load %arg4[%c4_58, %c0_59] : memref<16x32xf32, #tpu.memory_space<vmem>>, vector<1x32xf32>
    %118 = vector.broadcast %117 : vector<1x32xf32> to vector<2x32xf32>
    %119 = arith.addf %116, %118 : vector<2x32xf32>
    %cst_60 = arith.constant 0.000000e+00 : f32
    %120 = vector.broadcast %cst_60 : f32 to vector<2x32xf32>
    %121 = arith.cmpf oge, %119, %120 : vector<2x32xf32>
    %cst_61 = arith.constant 2.000000e-01 : f32
    %122 = vector.broadcast %cst_61 : f32 to vector<2x32xf32>
    %123 = arith.mulf %122, %119 : vector<2x32xf32>
    %124 = arith.select %121, %119, %123 : vector<2x32xi1>, vector<2x32xf32>
    %125 = arith.mulf %124, %124 : vector<2x32xf32>
    %cst_62 = arith.constant dense<0.000000e+00> : vector<2xf32>
    %126 = vector.multi_reduction <add>, %125, %cst_62 [1] : vector<2x32xf32> to vector<2xf32>
    %127 = vector.shape_cast %126 : vector<2xf32> to vector<2x1xf32>
    %cst_63 = arith.constant 3.200000e+01 : f32
    %128 = vector.broadcast %cst_63 : f32 to vector<2x1xf32>
    %129 = arith.divf %127, %128 : vector<2x1xf32>
    %cst_64 = arith.constant 9.99999993E-9 : f32
    %130 = vector.broadcast %cst_64 : f32 to vector<2x1xf32>
    %131 = arith.addf %129, %130 : vector<2x1xf32>
    %132 = math.rsqrt %131 : vector<2x1xf32>
    %133 = vector.broadcast %132 : vector<2x1xf32> to vector<2x32xf32>
    %134 = arith.mulf %124, %133 : vector<2x32xf32>
    %135 = vector.extract_strided_slice %134 {offsets = [0, 0], sizes = [1, 32], strides = [1, 1]} : vector<2x32xf32> to vector<1x32xf32>
    %c12 = arith.constant 12 : index
    %c0_65 = arith.constant 0 : index
    %136 = vector.load %arg10[%c12, %c0_65] : memref<48x32xf32, #tpu.memory_space<vmem>>, vector<1x32xf32>
    tpu.vector_store %arg10[%c12, %c0_65], %135 {strides = array<i32>} : memref<48x32xf32, #tpu.memory_space<vmem>>, vector<1x32xf32>,
    %137 = vector.extract_strided_slice %134 {offsets = [1, 0], sizes = [1, 32], strides = [1, 1]} : vector<2x32xf32> to vector<1x32xf32>
    %c28 = arith.constant 28 : index
    %c0_66 = arith.constant 0 : index
    %138 = vector.load %arg10[%c28, %c0_66] : memref<48x32xf32, #tpu.memory_space<vmem>>, vector<1x32xf32>
    tpu.vector_store %arg10[%c28, %c0_66], %137 {strides = array<i32>} : memref<48x32xf32, #tpu.memory_space<vmem>>, vector<1x32xf32>,
    %c5 = arith.constant 5 : index
    %c0_67 = arith.constant 0 : index
    %c0_68 = arith.constant 0 : index
    %139 = vector.load %arg3[%c5, %c0_67, %c0_68] : memref<16x24x32xbf16, #tpu.memory_space<vmem>>, vector<1x24x32xbf16>
    %140 = vector.shape_cast %139 : vector<1x24x32xbf16> to vector<24x32xbf16>
    %cst_69 = arith.constant dense<0.000000e+00> : vector<2x32xf32>
    %141 = tpu.matmul %13, %140, %cst_69 {dimension_numbers = #tpu.dot_dimension_numbers<[1], [0], [0], [1], [0, 0, 1, 1], [], []>} : vector<2x24xbf16>, vector<24x32xbf16>, vector<2x32xf32> -> vector<2x32xf32>
    %c5_70 = arith.constant 5 : index
    %c0_71 = arith.constant 0 : index
    %142 = vector.load %arg4[%c5_70, %c0_71] : memref<16x32xf32, #tpu.memory_space<vmem>>, vector<1x32xf32>
    %143 = vector.broadcast %142 : vector<1x32xf32> to vector<2x32xf32>
    %144 = arith.addf %141, %143 : vector<2x32xf32>
    %cst_72 = arith.constant 0.000000e+00 : f32
    %145 = vector.broadcast %cst_72 : f32 to vector<2x32xf32>
    %146 = arith.cmpf oge, %144, %145 : vector<2x32xf32>
    %cst_73 = arith.constant 2.000000e-01 : f32
    %147 = vector.broadcast %cst_73 : f32 to vector<2x32xf32>
    %148 = arith.mulf %147, %144 : vector<2x32xf32>
    %149 = arith.select %146, %144, %148 : vector<2x32xi1>, vector<2x32xf32>
    %150 = arith.mulf %149, %149 : vector<2x32xf32>
    %cst_74 = arith.constant dense<0.000000e+00> : vector<2xf32>
    %151 = vector.multi_reduction <add>, %150, %cst_74 [1] : vector<2x32xf32> to vector<2xf32>
    %152 = vector.shape_cast %151 : vector<2xf32> to vector<2x1xf32>
    %cst_75 = arith.constant 3.200000e+01 : f32
    %153 = vector.broadcast %cst_75 : f32 to vector<2x1xf32>
    %154 = arith.divf %152, %153 : vector<2x1xf32>
    %cst_76 = arith.constant 9.99999993E-9 : f32
    %155 = vector.broadcast %cst_76 : f32 to vector<2x1xf32>
    %156 = arith.addf %154, %155 : vector<2x1xf32>
    %157 = math.rsqrt %156 : vector<2x1xf32>
    %158 = vector.broadcast %157 : vector<2x1xf32> to vector<2x32xf32>
    %159 = arith.mulf %149, %158 : vector<2x32xf32>
    %160 = vector.extract_strided_slice %159 {offsets = [0, 0], sizes = [1, 32], strides = [1, 1]} : vector<2x32xf32> to vector<1x32xf32>
    %c13 = arith.constant 13 : index
    %c0_77 = arith.constant 0 : index
    %161 = vector.load %arg10[%c13, %c0_77] : memref<48x32xf32, #tpu.memory_space<vmem>>, vector<1x32xf32>
    tpu.vector_store %arg10[%c13, %c0_77], %160 {strides = array<i32>} : memref<48x32xf32, #tpu.memory_space<vmem>>, vector<1x32xf32>,
    %162 = vector.extract_strided_slice %159 {offsets = [1, 0], sizes = [1, 32], strides = [1, 1]} : vector<2x32xf32> to vector<1x32xf32>
    %c29 = arith.constant 29 : index
    %c0_78 = arith.constant 0 : index
    %163 = vector.load %arg10[%c29, %c0_78] : memref<48x32xf32, #tpu.memory_space<vmem>>, vector<1x32xf32>
    tpu.vector_store %arg10[%c29, %c0_78], %162 {strides = array<i32>} : memref<48x32xf32, #tpu.memory_space<vmem>>, vector<1x32xf32>,
    %c6 = arith.constant 6 : index
    %c0_79 = arith.constant 0 : index
    %c0_80 = arith.constant 0 : index
    %164 = vector.load %arg3[%c6, %c0_79, %c0_80] : memref<16x24x32xbf16, #tpu.memory_space<vmem>>, vector<1x24x32xbf16>
    %165 = vector.shape_cast %164 : vector<1x24x32xbf16> to vector<24x32xbf16>
    %cst_81 = arith.constant dense<0.000000e+00> : vector<2x32xf32>
    %166 = tpu.matmul %13, %165, %cst_81 {dimension_numbers = #tpu.dot_dimension_numbers<[1], [0], [0], [1], [0, 0, 1, 1], [], []>} : vector<2x24xbf16>, vector<24x32xbf16>, vector<2x32xf32> -> vector<2x32xf32>
    %c6_82 = arith.constant 6 : index
    %c0_83 = arith.constant 0 : index
    %167 = vector.load %arg4[%c6_82, %c0_83] : memref<16x32xf32, #tpu.memory_space<vmem>>, vector<1x32xf32>
    %168 = vector.broadcast %167 : vector<1x32xf32> to vector<2x32xf32>
    %169 = arith.addf %166, %168 : vector<2x32xf32>
    %cst_84 = arith.constant 0.000000e+00 : f32
    %170 = vector.broadcast %cst_84 : f32 to vector<2x32xf32>
    %171 = arith.cmpf oge, %169, %170 : vector<2x32xf32>
    %cst_85 = arith.constant 2.000000e-01 : f32
    %172 = vector.broadcast %cst_85 : f32 to vector<2x32xf32>
    %173 = arith.mulf %172, %169 : vector<2x32xf32>
    %174 = arith.select %171, %169, %173 : vector<2x32xi1>, vector<2x32xf32>
    %175 = arith.mulf %174, %174 : vector<2x32xf32>
    %cst_86 = arith.constant dense<0.000000e+00> : vector<2xf32>
    %176 = vector.multi_reduction <add>, %175, %cst_86 [1] : vector<2x32xf32> to vector<2xf32>
    %177 = vector.shape_cast %176 : vector<2xf32> to vector<2x1xf32>
    %cst_87 = arith.constant 3.200000e+01 : f32
    %178 = vector.broadcast %cst_87 : f32 to vector<2x1xf32>
    %179 = arith.divf %177, %178 : vector<2x1xf32>
    %cst_88 = arith.constant 9.99999993E-9 : f32
    %180 = vector.broadcast %cst_88 : f32 to vector<2x1xf32>
    %181 = arith.addf %179, %180 : vector<2x1xf32>
    %182 = math.rsqrt %181 : vector<2x1xf32>
    %183 = vector.broadcast %182 : vector<2x1xf32> to vector<2x32xf32>
    %184 = arith.mulf %174, %183 : vector<2x32xf32>
    %185 = vector.extract_strided_slice %184 {offsets = [0, 0], sizes = [1, 32], strides = [1, 1]} : vector<2x32xf32> to vector<1x32xf32>
    %c14 = arith.constant 14 : index
    %c0_89 = arith.constant 0 : index
    %186 = vector.load %arg10[%c14, %c0_89] : memref<48x32xf32, #tpu.memory_space<vmem>>, vector<1x32xf32>
    tpu.vector_store %arg10[%c14, %c0_89], %185 {strides = array<i32>} : memref<48x32xf32, #tpu.memory_space<vmem>>, vector<1x32xf32>,
    %187 = vector.extract_strided_slice %184 {offsets = [1, 0], sizes = [1, 32], strides = [1, 1]} : vector<2x32xf32> to vector<1x32xf32>
    %c30 = arith.constant 30 : index
    %c0_90 = arith.constant 0 : index
    %188 = vector.load %arg10[%c30, %c0_90] : memref<48x32xf32, #tpu.memory_space<vmem>>, vector<1x32xf32>
    tpu.vector_store %arg10[%c30, %c0_90], %187 {strides = array<i32>} : memref<48x32xf32, #tpu.memory_space<vmem>>, vector<1x32xf32>,
    %c7 = arith.constant 7 : index
    %c0_91 = arith.constant 0 : index
    %c0_92 = arith.constant 0 : index
    %189 = vector.load %arg3[%c7, %c0_91, %c0_92] : memref<16x24x32xbf16, #tpu.memory_space<vmem>>, vector<1x24x32xbf16>
    %190 = vector.shape_cast %189 : vector<1x24x32xbf16> to vector<24x32xbf16>
    %cst_93 = arith.constant dense<0.000000e+00> : vector<2x32xf32>
    %191 = tpu.matmul %13, %190, %cst_93 {dimension_numbers = #tpu.dot_dimension_numbers<[1], [0], [0], [1], [0, 0, 1, 1], [], []>} : vector<2x24xbf16>, vector<24x32xbf16>, vector<2x32xf32> -> vector<2x32xf32>
    %c7_94 = arith.constant 7 : index
    %c0_95 = arith.constant 0 : index
    %192 = vector.load %arg4[%c7_94, %c0_95] : memref<16x32xf32, #tpu.memory_space<vmem>>, vector<1x32xf32>
    %193 = vector.broadcast %192 : vector<1x32xf32> to vector<2x32xf32>
    %194 = arith.addf %191, %193 : vector<2x32xf32>
    %cst_96 = arith.constant 0.000000e+00 : f32
    %195 = vector.broadcast %cst_96 : f32 to vector<2x32xf32>
    %196 = arith.cmpf oge, %194, %195 : vector<2x32xf32>
    %cst_97 = arith.constant 2.000000e-01 : f32
    %197 = vector.broadcast %cst_97 : f32 to vector<2x32xf32>
    %198 = arith.mulf %197, %194 : vector<2x32xf32>
    %199 = arith.select %196, %194, %198 : vector<2x32xi1>, vector<2x32xf32>
    %200 = arith.mulf %199, %199 : vector<2x32xf32>
    %cst_98 = arith.constant dense<0.000000e+00> : vector<2xf32>
    %201 = vector.multi_reduction <add>, %200, %cst_98 [1] : vector<2x32xf32> to vector<2xf32>
    %202 = vector.shape_cast %201 : vector<2xf32> to vector<2x1xf32>
    %cst_99 = arith.constant 3.200000e+01 : f32
    %203 = vector.broadcast %cst_99 : f32 to vector<2x1xf32>
    %204 = arith.divf %202, %203 : vector<2x1xf32>
    %cst_100 = arith.constant 9.99999993E-9 : f32
    %205 = vector.broadcast %cst_100 : f32 to vector<2x1xf32>
    %206 = arith.addf %204, %205 : vector<2x1xf32>
    %207 = math.rsqrt %206 : vector<2x1xf32>
    %208 = vector.broadcast %207 : vector<2x1xf32> to vector<2x32xf32>
    %209 = arith.mulf %199, %208 : vector<2x32xf32>
    %210 = vector.extract_strided_slice %209 {offsets = [0, 0], sizes = [1, 32], strides = [1, 1]} : vector<2x32xf32> to vector<1x32xf32>
    %c15 = arith.constant 15 : index
    %c0_101 = arith.constant 0 : index
    %211 = vector.load %arg10[%c15, %c0_101] : memref<48x32xf32, #tpu.memory_space<vmem>>, vector<1x32xf32>
    tpu.vector_store %arg10[%c15, %c0_101], %210 {strides = array<i32>} : memref<48x32xf32, #tpu.memory_space<vmem>>, vector<1x32xf32>,
    %212 = vector.extract_strided_slice %209 {offsets = [1, 0], sizes = [1, 32], strides = [1, 1]} : vector<2x32xf32> to vector<1x32xf32>
    %c31 = arith.constant 31 : index
    %c0_102 = arith.constant 0 : index
    %213 = vector.load %arg10[%c31, %c0_102] : memref<48x32xf32, #tpu.memory_space<vmem>>, vector<1x32xf32>
    tpu.vector_store %arg10[%c31, %c0_102], %212 {strides = array<i32>} : memref<48x32xf32, #tpu.memory_space<vmem>>, vector<1x32xf32>,
    %c8_103 = arith.constant 8 : index
    %c0_104 = arith.constant 0 : index
    %c0_105 = arith.constant 0 : index
    %214 = vector.load %arg3[%c8_103, %c0_104, %c0_105] : memref<16x24x32xbf16, #tpu.memory_space<vmem>>, vector<1x24x32xbf16>
    %215 = vector.shape_cast %214 : vector<1x24x32xbf16> to vector<24x32xbf16>
    %cst_106 = arith.constant dense<0.000000e+00> : vector<2x32xf32>
    %216 = tpu.matmul %13, %215, %cst_106 {dimension_numbers = #tpu.dot_dimension_numbers<[1], [0], [0], [1], [0, 0, 1, 1], [], []>} : vector<2x24xbf16>, vector<24x32xbf16>, vector<2x32xf32> -> vector<2x32xf32>
    %c8_107 = arith.constant 8 : index
    %c0_108 = arith.constant 0 : index
    %217 = vector.load %arg4[%c8_107, %c0_108] : memref<16x32xf32, #tpu.memory_space<vmem>>, vector<1x32xf32>
    %218 = vector.broadcast %217 : vector<1x32xf32> to vector<2x32xf32>
    %219 = arith.addf %216, %218 : vector<2x32xf32>
    %cst_109 = arith.constant 0.000000e+00 : f32
    %220 = vector.broadcast %cst_109 : f32 to vector<2x32xf32>
    %221 = arith.cmpf oge, %219, %220 : vector<2x32xf32>
    %cst_110 = arith.constant 2.000000e-01 : f32
    %222 = vector.broadcast %cst_110 : f32 to vector<2x32xf32>
    %223 = arith.mulf %222, %219 : vector<2x32xf32>
    %224 = arith.select %221, %219, %223 : vector<2x32xi1>, vector<2x32xf32>
    %225 = arith.mulf %224, %224 : vector<2x32xf32>
    %cst_111 = arith.constant dense<0.000000e+00> : vector<2xf32>
    %226 = vector.multi_reduction <add>, %225, %cst_111 [1] : vector<2x32xf32> to vector<2xf32>
    %227 = vector.shape_cast %226 : vector<2xf32> to vector<2x1xf32>
    %cst_112 = arith.constant 3.200000e+01 : f32
    %228 = vector.broadcast %cst_112 : f32 to vector<2x1xf32>
    %229 = arith.divf %227, %228 : vector<2x1xf32>
    %cst_113 = arith.constant 9.99999993E-9 : f32
    %230 = vector.broadcast %cst_113 : f32 to vector<2x1xf32>
    %231 = arith.addf %229, %230 : vector<2x1xf32>
    %232 = math.rsqrt %231 : vector<2x1xf32>
    %233 = vector.broadcast %232 : vector<2x1xf32> to vector<2x32xf32>
    %234 = arith.mulf %224, %233 : vector<2x32xf32>
    %235 = vector.extract_strided_slice %234 {offsets = [0, 0], sizes = [1, 32], strides = [1, 1]} : vector<2x32xf32> to vector<1x32xf32>
    %c16 = arith.constant 16 : index
    %c0_114 = arith.constant 0 : index
    %236 = vector.load %arg10[%c16, %c0_114] : memref<48x32xf32, #tpu.memory_space<vmem>>, vector<1x32xf32>
    tpu.vector_store %arg10[%c16, %c0_114], %235 {strides = array<i32>} : memref<48x32xf32, #tpu.memory_space<vmem>>, vector<1x32xf32>,
    %237 = vector.extract_strided_slice %234 {offsets = [1, 0], sizes = [1, 32], strides = [1, 1]} : vector<2x32xf32> to vector<1x32xf32>
    %c32 = arith.constant 32 : index
    %c0_115 = arith.constant 0 : index
    %238 = vector.load %arg10[%c32, %c0_115] : memref<48x32xf32, #tpu.memory_space<vmem>>, vector<1x32xf32>
    tpu.vector_store %arg10[%c32, %c0_115], %237 {strides = array<i32>} : memref<48x32xf32, #tpu.memory_space<vmem>>, vector<1x32xf32>,
    %c9_116 = arith.constant 9 : index
    %c0_117 = arith.constant 0 : index
    %c0_118 = arith.constant 0 : index
    %239 = vector.load %arg3[%c9_116, %c0_117, %c0_118] : memref<16x24x32xbf16, #tpu.memory_space<vmem>>, vector<1x24x32xbf16>
    %240 = vector.shape_cast %239 : vector<1x24x32xbf16> to vector<24x32xbf16>
    %cst_119 = arith.constant dense<0.000000e+00> : vector<2x32xf32>
    %241 = tpu.matmul %13, %240, %cst_119 {dimension_numbers = #tpu.dot_dimension_numbers<[1], [0], [0], [1], [0, 0, 1, 1], [], []>} : vector<2x24xbf16>, vector<24x32xbf16>, vector<2x32xf32> -> vector<2x32xf32>
    %c9_120 = arith.constant 9 : index
    %c0_121 = arith.constant 0 : index
    %242 = vector.load %arg4[%c9_120, %c0_121] : memref<16x32xf32, #tpu.memory_space<vmem>>, vector<1x32xf32>
    %243 = vector.broadcast %242 : vector<1x32xf32> to vector<2x32xf32>
    %244 = arith.addf %241, %243 : vector<2x32xf32>
    %cst_122 = arith.constant 0.000000e+00 : f32
    %245 = vector.broadcast %cst_122 : f32 to vector<2x32xf32>
    %246 = arith.cmpf oge, %244, %245 : vector<2x32xf32>
    %cst_123 = arith.constant 2.000000e-01 : f32
    %247 = vector.broadcast %cst_123 : f32 to vector<2x32xf32>
    %248 = arith.mulf %247, %244 : vector<2x32xf32>
    %249 = arith.select %246, %244, %248 : vector<2x32xi1>, vector<2x32xf32>
    %250 = arith.mulf %249, %249 : vector<2x32xf32>
    %cst_124 = arith.constant dense<0.000000e+00> : vector<2xf32>
    %251 = vector.multi_reduction <add>, %250, %cst_124 [1] : vector<2x32xf32> to vector<2xf32>
    %252 = vector.shape_cast %251 : vector<2xf32> to vector<2x1xf32>
    %cst_125 = arith.constant 3.200000e+01 : f32
    %253 = vector.broadcast %cst_125 : f32 to vector<2x1xf32>
    %254 = arith.divf %252, %253 : vector<2x1xf32>
    %cst_126 = arith.constant 9.99999993E-9 : f32
    %255 = vector.broadcast %cst_126 : f32 to vector<2x1xf32>
    %256 = arith.addf %254, %255 : vector<2x1xf32>
    %257 = math.rsqrt %256 : vector<2x1xf32>
    %258 = vector.broadcast %257 : vector<2x1xf32> to vector<2x32xf32>
    %259 = arith.mulf %249, %258 : vector<2x32xf32>
    %260 = vector.extract_strided_slice %259 {offsets = [0, 0], sizes = [1, 32], strides = [1, 1]} : vector<2x32xf32> to vector<1x32xf32>
    %c17 = arith.constant 17 : index
    %c0_127 = arith.constant 0 : index
    %261 = vector.load %arg10[%c17, %c0_127] : memref<48x32xf32, #tpu.memory_space<vmem>>, vector<1x32xf32>
    tpu.vector_store %arg10[%c17, %c0_127], %260 {strides = array<i32>} : memref<48x32xf32, #tpu.memory_space<vmem>>, vector<1x32xf32>,
    %262 = vector.extract_strided_slice %259 {offsets = [1, 0], sizes = [1, 32], strides = [1, 1]} : vector<2x32xf32> to vector<1x32xf32>
    %c33 = arith.constant 33 : index
    %c0_128 = arith.constant 0 : index
    %263 = vector.load %arg10[%c33, %c0_128] : memref<48x32xf32, #tpu.memory_space<vmem>>, vector<1x32xf32>
    tpu.vector_store %arg10[%c33, %c0_128], %262 {strides = array<i32>} : memref<48x32xf32, #tpu.memory_space<vmem>>, vector<1x32xf32>,
    %c10_129 = arith.constant 10 : index
    %c0_130 = arith.constant 0 : index
    %c0_131 = arith.constant 0 : index
    %264 = vector.load %arg3[%c10_129, %c0_130, %c0_131] : memref<16x24x32xbf16, #tpu.memory_space<vmem>>, vector<1x24x32xbf16>
    %265 = vector.shape_cast %264 : vector<1x24x32xbf16> to vector<24x32xbf16>
    %cst_132 = arith.constant dense<0.000000e+00> : vector<2x32xf32>
    %266 = tpu.matmul %13, %265, %cst_132 {dimension_numbers = #tpu.dot_dimension_numbers<[1], [0], [0], [1], [0, 0, 1, 1], [], []>} : vector<2x24xbf16>, vector<24x32xbf16>, vector<2x32xf32> -> vector<2x32xf32>
    %c10_133 = arith.constant 10 : index
    %c0_134 = arith.constant 0 : index
    %267 = vector.load %arg4[%c10_133, %c0_134] : memref<16x32xf32, #tpu.memory_space<vmem>>, vector<1x32xf32>
    %268 = vector.broadcast %267 : vector<1x32xf32> to vector<2x32xf32>
    %269 = arith.addf %266, %268 : vector<2x32xf32>
    %cst_135 = arith.constant 0.000000e+00 : f32
    %270 = vector.broadcast %cst_135 : f32 to vector<2x32xf32>
    %271 = arith.cmpf oge, %269, %270 : vector<2x32xf32>
    %cst_136 = arith.constant 2.000000e-01 : f32
    %272 = vector.broadcast %cst_136 : f32 to vector<2x32xf32>
    %273 = arith.mulf %272, %269 : vector<2x32xf32>
    %274 = arith.select %271, %269, %273 : vector<2x32xi1>, vector<2x32xf32>
    %275 = arith.mulf %274, %274 : vector<2x32xf32>
    %cst_137 = arith.constant dense<0.000000e+00> : vector<2xf32>
    %276 = vector.multi_reduction <add>, %275, %cst_137 [1] : vector<2x32xf32> to vector<2xf32>
    %277 = vector.shape_cast %276 : vector<2xf32> to vector<2x1xf32>
    %cst_138 = arith.constant 3.200000e+01 : f32
    %278 = vector.broadcast %cst_138 : f32 to vector<2x1xf32>
    %279 = arith.divf %277, %278 : vector<2x1xf32>
    %cst_139 = arith.constant 9.99999993E-9 : f32
    %280 = vector.broadcast %cst_139 : f32 to vector<2x1xf32>
    %281 = arith.addf %279, %280 : vector<2x1xf32>
    %282 = math.rsqrt %281 : vector<2x1xf32>
    %283 = vector.broadcast %282 : vector<2x1xf32> to vector<2x32xf32>
    %284 = arith.mulf %274, %283 : vector<2x32xf32>
    %285 = vector.extract_strided_slice %284 {offsets = [0, 0], sizes = [1, 32], strides = [1, 1]} : vector<2x32xf32> to vector<1x32xf32>
    %c18 = arith.constant 18 : index
    %c0_140 = arith.constant 0 : index
    %286 = vector.load %arg10[%c18, %c0_140] : memref<48x32xf32, #tpu.memory_space<vmem>>, vector<1x32xf32>
    tpu.vector_store %arg10[%c18, %c0_140], %285 {strides = array<i32>} : memref<48x32xf32, #tpu.memory_space<vmem>>, vector<1x32xf32>,
    %287 = vector.extract_strided_slice %284 {offsets = [1, 0], sizes = [1, 32], strides = [1, 1]} : vector<2x32xf32> to vector<1x32xf32>
    %c34 = arith.constant 34 : index
    %c0_141 = arith.constant 0 : index
    %288 = vector.load %arg10[%c34, %c0_141] : memref<48x32xf32, #tpu.memory_space<vmem>>, vector<1x32xf32>
    tpu.vector_store %arg10[%c34, %c0_141], %287 {strides = array<i32>} : memref<48x32xf32, #tpu.memory_space<vmem>>, vector<1x32xf32>,
    %c11_142 = arith.constant 11 : index
    %c0_143 = arith.constant 0 : index
    %c0_144 = arith.constant 0 : index
    %289 = vector.load %arg3[%c11_142, %c0_143, %c0_144] : memref<16x24x32xbf16, #tpu.memory_space<vmem>>, vector<1x24x32xbf16>
    %290 = vector.shape_cast %289 : vector<1x24x32xbf16> to vector<24x32xbf16>
    %cst_145 = arith.constant dense<0.000000e+00> : vector<2x32xf32>
    %291 = tpu.matmul %13, %290, %cst_145 {dimension_numbers = #tpu.dot_dimension_numbers<[1], [0], [0], [1], [0, 0, 1, 1], [], []>} : vector<2x24xbf16>, vector<24x32xbf16>, vector<2x32xf32> -> vector<2x32xf32>
    %c11_146 = arith.constant 11 : index
    %c0_147 = arith.constant 0 : index
    %292 = vector.load %arg4[%c11_146, %c0_147] : memref<16x32xf32, #tpu.memory_space<vmem>>, vector<1x32xf32>
    %293 = vector.broadcast %292 : vector<1x32xf32> to vector<2x32xf32>
    %294 = arith.addf %291, %293 : vector<2x32xf32>
    %cst_148 = arith.constant 0.000000e+00 : f32
    %295 = vector.broadcast %cst_148 : f32 to vector<2x32xf32>
    %296 = arith.cmpf oge, %294, %295 : vector<2x32xf32>
    %cst_149 = arith.constant 2.000000e-01 : f32
    %297 = vector.broadcast %cst_149 : f32 to vector<2x32xf32>
    %298 = arith.mulf %297, %294 : vector<2x32xf32>
    %299 = arith.select %296, %294, %298 : vector<2x32xi1>, vector<2x32xf32>
    %300 = arith.mulf %299, %299 : vector<2x32xf32>
    %cst_150 = arith.constant dense<0.000000e+00> : vector<2xf32>
    %301 = vector.multi_reduction <add>, %300, %cst_150 [1] : vector<2x32xf32> to vector<2xf32>
    %302 = vector.shape_cast %301 : vector<2xf32> to vector<2x1xf32>
    %cst_151 = arith.constant 3.200000e+01 : f32
    %303 = vector.broadcast %cst_151 : f32 to vector<2x1xf32>
    %304 = arith.divf %302, %303 : vector<2x1xf32>
    %cst_152 = arith.constant 9.99999993E-9 : f32
    %305 = vector.broadcast %cst_152 : f32 to vector<2x1xf32>
    %306 = arith.addf %304, %305 : vector<2x1xf32>
    %307 = math.rsqrt %306 : vector<2x1xf32>
    %308 = vector.broadcast %307 : vector<2x1xf32> to vector<2x32xf32>
    %309 = arith.mulf %299, %308 : vector<2x32xf32>
    %310 = vector.extract_strided_slice %309 {offsets = [0, 0], sizes = [1, 32], strides = [1, 1]} : vector<2x32xf32> to vector<1x32xf32>
    %c19 = arith.constant 19 : index
    %c0_153 = arith.constant 0 : index
    %311 = vector.load %arg10[%c19, %c0_153] : memref<48x32xf32, #tpu.memory_space<vmem>>, vector<1x32xf32>
    tpu.vector_store %arg10[%c19, %c0_153], %310 {strides = array<i32>} : memref<48x32xf32, #tpu.memory_space<vmem>>, vector<1x32xf32>,
    %312 = vector.extract_strided_slice %309 {offsets = [1, 0], sizes = [1, 32], strides = [1, 1]} : vector<2x32xf32> to vector<1x32xf32>
    %c35 = arith.constant 35 : index
    %c0_154 = arith.constant 0 : index
    %313 = vector.load %arg10[%c35, %c0_154] : memref<48x32xf32, #tpu.memory_space<vmem>>, vector<1x32xf32>
    tpu.vector_store %arg10[%c35, %c0_154], %312 {strides = array<i32>} : memref<48x32xf32, #tpu.memory_space<vmem>>, vector<1x32xf32>,
    %c12_155 = arith.constant 12 : index
    %c0_156 = arith.constant 0 : index
    %c0_157 = arith.constant 0 : index
    %314 = vector.load %arg3[%c12_155, %c0_156, %c0_157] : memref<16x24x32xbf16, #tpu.memory_space<vmem>>, vector<1x24x32xbf16>
    %315 = vector.shape_cast %314 : vector<1x24x32xbf16> to vector<24x32xbf16>
    %cst_158 = arith.constant dense<0.000000e+00> : vector<2x32xf32>
    %316 = tpu.matmul %13, %315, %cst_158 {dimension_numbers = #tpu.dot_dimension_numbers<[1], [0], [0], [1], [0, 0, 1, 1], [], []>} : vector<2x24xbf16>, vector<24x32xbf16>, vector<2x32xf32> -> vector<2x32xf32>
    %c12_159 = arith.constant 12 : index
    %c0_160 = arith.constant 0 : index
    %317 = vector.load %arg4[%c12_159, %c0_160] : memref<16x32xf32, #tpu.memory_space<vmem>>, vector<1x32xf32>
    %318 = vector.broadcast %317 : vector<1x32xf32> to vector<2x32xf32>
    %319 = arith.addf %316, %318 : vector<2x32xf32>
    %cst_161 = arith.constant 0.000000e+00 : f32
    %320 = vector.broadcast %cst_161 : f32 to vector<2x32xf32>
    %321 = arith.cmpf oge, %319, %320 : vector<2x32xf32>
    %cst_162 = arith.constant 2.000000e-01 : f32
    %322 = vector.broadcast %cst_162 : f32 to vector<2x32xf32>
    %323 = arith.mulf %322, %319 : vector<2x32xf32>
    %324 = arith.select %321, %319, %323 : vector<2x32xi1>, vector<2x32xf32>
    %325 = arith.mulf %324, %324 : vector<2x32xf32>
    %cst_163 = arith.constant dense<0.000000e+00> : vector<2xf32>
    %326 = vector.multi_reduction <add>, %325, %cst_163 [1] : vector<2x32xf32> to vector<2xf32>
    %327 = vector.shape_cast %326 : vector<2xf32> to vector<2x1xf32>
    %cst_164 = arith.constant 3.200000e+01 : f32
    %328 = vector.broadcast %cst_164 : f32 to vector<2x1xf32>
    %329 = arith.divf %327, %328 : vector<2x1xf32>
    %cst_165 = arith.constant 9.99999993E-9 : f32
    %330 = vector.broadcast %cst_165 : f32 to vector<2x1xf32>
    %331 = arith.addf %329, %330 : vector<2x1xf32>
    %332 = math.rsqrt %331 : vector<2x1xf32>
    %333 = vector.broadcast %332 : vector<2x1xf32> to vector<2x32xf32>
    %334 = arith.mulf %324, %333 : vector<2x32xf32>
    %335 = vector.extract_strided_slice %334 {offsets = [0, 0], sizes = [1, 32], strides = [1, 1]} : vector<2x32xf32> to vector<1x32xf32>
    %c20 = arith.constant 20 : index
    %c0_166 = arith.constant 0 : index
    %336 = vector.load %arg10[%c20, %c0_166] : memref<48x32xf32, #tpu.memory_space<vmem>>, vector<1x32xf32>
    tpu.vector_store %arg10[%c20, %c0_166], %335 {strides = array<i32>} : memref<48x32xf32, #tpu.memory_space<vmem>>, vector<1x32xf32>,
    %337 = vector.extract_strided_slice %334 {offsets = [1, 0], sizes = [1, 32], strides = [1, 1]} : vector<2x32xf32> to vector<1x32xf32>
    %c36 = arith.constant 36 : index
    %c0_167 = arith.constant 0 : index
    %338 = vector.load %arg10[%c36, %c0_167] : memref<48x32xf32, #tpu.memory_space<vmem>>, vector<1x32xf32>
    tpu.vector_store %arg10[%c36, %c0_167], %337 {strides = array<i32>} : memref<48x32xf32, #tpu.memory_space<vmem>>, vector<1x32xf32>,
    %c13_168 = arith.constant 13 : index
    %c0_169 = arith.constant 0 : index
    %c0_170 = arith.constant 0 : index
    %339 = vector.load %arg3[%c13_168, %c0_169, %c0_170] : memref<16x24x32xbf16, #tpu.memory_space<vmem>>, vector<1x24x32xbf16>
    %340 = vector.shape_cast %339 : vector<1x24x32xbf16> to vector<24x32xbf16>
    %cst_171 = arith.constant dense<0.000000e+00> : vector<2x32xf32>
    %341 = tpu.matmul %13, %340, %cst_171 {dimension_numbers = #tpu.dot_dimension_numbers<[1], [0], [0], [1], [0, 0, 1, 1], [], []>} : vector<2x24xbf16>, vector<24x32xbf16>, vector<2x32xf32> -> vector<2x32xf32>
    %c13_172 = arith.constant 13 : index
    %c0_173 = arith.constant 0 : index
    %342 = vector.load %arg4[%c13_172, %c0_173] : memref<16x32xf32, #tpu.memory_space<vmem>>, vector<1x32xf32>
    %343 = vector.broadcast %342 : vector<1x32xf32> to vector<2x32xf32>
    %344 = arith.addf %341, %343 : vector<2x32xf32>
    %cst_174 = arith.constant 0.000000e+00 : f32
    %345 = vector.broadcast %cst_174 : f32 to vector<2x32xf32>
    %346 = arith.cmpf oge, %344, %345 : vector<2x32xf32>
    %cst_175 = arith.constant 2.000000e-01 : f32
    %347 = vector.broadcast %cst_175 : f32 to vector<2x32xf32>
    %348 = arith.mulf %347, %344 : vector<2x32xf32>
    %349 = arith.select %346, %344, %348 : vector<2x32xi1>, vector<2x32xf32>
    %350 = arith.mulf %349, %349 : vector<2x32xf32>
    %cst_176 = arith.constant dense<0.000000e+00> : vector<2xf32>
    %351 = vector.multi_reduction <add>, %350, %cst_176 [1] : vector<2x32xf32> to vector<2xf32>
    %352 = vector.shape_cast %351 : vector<2xf32> to vector<2x1xf32>
    %cst_177 = arith.constant 3.200000e+01 : f32
    %353 = vector.broadcast %cst_177 : f32 to vector<2x1xf32>
    %354 = arith.divf %352, %353 : vector<2x1xf32>
    %cst_178 = arith.constant 9.99999993E-9 : f32
    %355 = vector.broadcast %cst_178 : f32 to vector<2x1xf32>
    %356 = arith.addf %354, %355 : vector<2x1xf32>
    %357 = math.rsqrt %356 : vector<2x1xf32>
    %358 = vector.broadcast %357 : vector<2x1xf32> to vector<2x32xf32>
    %359 = arith.mulf %349, %358 : vector<2x32xf32>
    %360 = vector.extract_strided_slice %359 {offsets = [0, 0], sizes = [1, 32], strides = [1, 1]} : vector<2x32xf32> to vector<1x32xf32>
    %c21 = arith.constant 21 : index
    %c0_179 = arith.constant 0 : index
    %361 = vector.load %arg10[%c21, %c0_179] : memref<48x32xf32, #tpu.memory_space<vmem>>, vector<1x32xf32>
    tpu.vector_store %arg10[%c21, %c0_179], %360 {strides = array<i32>} : memref<48x32xf32, #tpu.memory_space<vmem>>, vector<1x32xf32>,
    %362 = vector.extract_strided_slice %359 {offsets = [1, 0], sizes = [1, 32], strides = [1, 1]} : vector<2x32xf32> to vector<1x32xf32>
    %c37 = arith.constant 37 : index
    %c0_180 = arith.constant 0 : index
    %363 = vector.load %arg10[%c37, %c0_180] : memref<48x32xf32, #tpu.memory_space<vmem>>, vector<1x32xf32>
    tpu.vector_store %arg10[%c37, %c0_180], %362 {strides = array<i32>} : memref<48x32xf32, #tpu.memory_space<vmem>>, vector<1x32xf32>,
    %c14_181 = arith.constant 14 : index
    %c0_182 = arith.constant 0 : index
    %c0_183 = arith.constant 0 : index
    %364 = vector.load %arg3[%c14_181, %c0_182, %c0_183] : memref<16x24x32xbf16, #tpu.memory_space<vmem>>, vector<1x24x32xbf16>
    %365 = vector.shape_cast %364 : vector<1x24x32xbf16> to vector<24x32xbf16>
    %cst_184 = arith.constant dense<0.000000e+00> : vector<2x32xf32>
    %366 = tpu.matmul %13, %365, %cst_184 {dimension_numbers = #tpu.dot_dimension_numbers<[1], [0], [0], [1], [0, 0, 1, 1], [], []>} : vector<2x24xbf16>, vector<24x32xbf16>, vector<2x32xf32> -> vector<2x32xf32>
    %c14_185 = arith.constant 14 : index
    %c0_186 = arith.constant 0 : index
    %367 = vector.load %arg4[%c14_185, %c0_186] : memref<16x32xf32, #tpu.memory_space<vmem>>, vector<1x32xf32>
    %368 = vector.broadcast %367 : vector<1x32xf32> to vector<2x32xf32>
    %369 = arith.addf %366, %368 : vector<2x32xf32>
    %cst_187 = arith.constant 0.000000e+00 : f32
    %370 = vector.broadcast %cst_187 : f32 to vector<2x32xf32>
    %371 = arith.cmpf oge, %369, %370 : vector<2x32xf32>
    %cst_188 = arith.constant 2.000000e-01 : f32
    %372 = vector.broadcast %cst_188 : f32 to vector<2x32xf32>
    %373 = arith.mulf %372, %369 : vector<2x32xf32>
    %374 = arith.select %371, %369, %373 : vector<2x32xi1>, vector<2x32xf32>
    %375 = arith.mulf %374, %374 : vector<2x32xf32>
    %cst_189 = arith.constant dense<0.000000e+00> : vector<2xf32>
    %376 = vector.multi_reduction <add>, %375, %cst_189 [1] : vector<2x32xf32> to vector<2xf32>
    %377 = vector.shape_cast %376 : vector<2xf32> to vector<2x1xf32>
    %cst_190 = arith.constant 3.200000e+01 : f32
    %378 = vector.broadcast %cst_190 : f32 to vector<2x1xf32>
    %379 = arith.divf %377, %378 : vector<2x1xf32>
    %cst_191 = arith.constant 9.99999993E-9 : f32
    %380 = vector.broadcast %cst_191 : f32 to vector<2x1xf32>
    %381 = arith.addf %379, %380 : vector<2x1xf32>
    %382 = math.rsqrt %381 : vector<2x1xf32>
    %383 = vector.broadcast %382 : vector<2x1xf32> to vector<2x32xf32>
    %384 = arith.mulf %374, %383 : vector<2x32xf32>
    %385 = vector.extract_strided_slice %384 {offsets = [0, 0], sizes = [1, 32], strides = [1, 1]} : vector<2x32xf32> to vector<1x32xf32>
    %c22 = arith.constant 22 : index
    %c0_192 = arith.constant 0 : index
    %386 = vector.load %arg10[%c22, %c0_192] : memref<48x32xf32, #tpu.memory_space<vmem>>, vector<1x32xf32>
    tpu.vector_store %arg10[%c22, %c0_192], %385 {strides = array<i32>} : memref<48x32xf32, #tpu.memory_space<vmem>>, vector<1x32xf32>,
    %387 = vector.extract_strided_slice %384 {offsets = [1, 0], sizes = [1, 32], strides = [1, 1]} : vector<2x32xf32> to vector<1x32xf32>
    %c38 = arith.constant 38 : index
    %c0_193 = arith.constant 0 : index
    %388 = vector.load %arg10[%c38, %c0_193] : memref<48x32xf32, #tpu.memory_space<vmem>>, vector<1x32xf32>
    tpu.vector_store %arg10[%c38, %c0_193], %387 {strides = array<i32>} : memref<48x32xf32, #tpu.memory_space<vmem>>, vector<1x32xf32>,
    %c15_194 = arith.constant 15 : index
    %c0_195 = arith.constant 0 : index
    %c0_196 = arith.constant 0 : index
    %389 = vector.load %arg3[%c15_194, %c0_195, %c0_196] : memref<16x24x32xbf16, #tpu.memory_space<vmem>>, vector<1x24x32xbf16>
    %390 = vector.shape_cast %389 : vector<1x24x32xbf16> to vector<24x32xbf16>
    %cst_197 = arith.constant dense<0.000000e+00> : vector<2x32xf32>
    %391 = tpu.matmul %13, %390, %cst_197 {dimension_numbers = #tpu.dot_dimension_numbers<[1], [0], [0], [1], [0, 0, 1, 1], [], []>} : vector<2x24xbf16>, vector<24x32xbf16>, vector<2x32xf32> -> vector<2x32xf32>
    %c15_198 = arith.constant 15 : index
    %c0_199 = arith.constant 0 : index
    %392 = vector.load %arg4[%c15_198, %c0_199] : memref<16x32xf32, #tpu.memory_space<vmem>>, vector<1x32xf32>
    %393 = vector.broadcast %392 : vector<1x32xf32> to vector<2x32xf32>
    %394 = arith.addf %391, %393 : vector<2x32xf32>
    %cst_200 = arith.constant 0.000000e+00 : f32
    %395 = vector.broadcast %cst_200 : f32 to vector<2x32xf32>
    %396 = arith.cmpf oge, %394, %395 : vector<2x32xf32>
    %cst_201 = arith.constant 2.000000e-01 : f32
    %397 = vector.broadcast %cst_201 : f32 to vector<2x32xf32>
    %398 = arith.mulf %397, %394 : vector<2x32xf32>
    %399 = arith.select %396, %394, %398 : vector<2x32xi1>, vector<2x32xf32>
    %400 = arith.mulf %399, %399 : vector<2x32xf32>
    %cst_202 = arith.constant dense<0.000000e+00> : vector<2xf32>
    %401 = vector.multi_reduction <add>, %400, %cst_202 [1] : vector<2x32xf32> to vector<2xf32>
    %402 = vector.shape_cast %401 : vector<2xf32> to vector<2x1xf32>
    %cst_203 = arith.constant 3.200000e+01 : f32
    %403 = vector.broadcast %cst_203 : f32 to vector<2x1xf32>
    %404 = arith.divf %402, %403 : vector<2x1xf32>
    %cst_204 = arith.constant 9.99999993E-9 : f32
    %405 = vector.broadcast %cst_204 : f32 to vector<2x1xf32>
    %406 = arith.addf %404, %405 : vector<2x1xf32>
    %407 = math.rsqrt %406 : vector<2x1xf32>
    %408 = vector.broadcast %407 : vector<2x1xf32> to vector<2x32xf32>
    %409 = arith.mulf %399, %408 : vector<2x32xf32>
    %410 = vector.extract_strided_slice %409 {offsets = [0, 0], sizes = [1, 32], strides = [1, 1]} : vector<2x32xf32> to vector<1x32xf32>
    %c23 = arith.constant 23 : index
    %c0_205 = arith.constant 0 : index
    %411 = vector.load %arg10[%c23, %c0_205] : memref<48x32xf32, #tpu.memory_space<vmem>>, vector<1x32xf32>
    tpu.vector_store %arg10[%c23, %c0_205], %410 {strides = array<i32>} : memref<48x32xf32, #tpu.memory_space<vmem>>, vector<1x32xf32>,
    %412 = vector.extract_strided_slice %409 {offsets = [1, 0], sizes = [1, 32], strides = [1, 1]} : vector<2x32xf32> to vector<1x32xf32>
    %c39 = arith.constant 39 : index
    %c0_206 = arith.constant 0 : index
    %413 = vector.load %arg10[%c39, %c0_206] : memref<48x32xf32, #tpu.memory_space<vmem>>, vector<1x32xf32>
    tpu.vector_store %arg10[%c39, %c0_206], %412 {strides = array<i32>} : memref<48x32xf32, #tpu.memory_space<vmem>>, vector<1x32xf32>,
    %cst_207 = arith.constant 0.000000e+00 : f32
    %414 = vector.broadcast %cst_207 : f32 to vector<32x32xf32>
    %c0_208 = arith.constant 0 : index
    %c0_209 = arith.constant 0 : index
    %415 = vector.load %arg6[%c0_208, %c0_209] : memref<1x32xf32, #tpu.memory_space<vmem>>, vector<1x32xf32>
    %416 = vector.broadcast %415 : vector<1x32xf32> to vector<32x32xf32>
    %417 = arith.addf %414, %416 : vector<32x32xf32>
    %c3_210 = arith.constant 3 : index
    %c0_211 = arith.constant 0 : index
    %418 = vector.load %arg10[%c3_210, %c0_211] : memref<48x32xf32, #tpu.memory_space<vmem>>, vector<32x32xf32>
    %c0_212 = arith.constant 0 : index
    %c0_213 = arith.constant 0 : index
    %c0_214 = arith.constant 0 : index
    %419 = vector.load %arg2[%c0_212, %c0_213, %c0_214] : memref<9x32x1xf32, #tpu.memory_space<vmem>>, vector<1x32x1xf32>
    %420 = vector.shape_cast %419 : vector<1x32x1xf32> to vector<32x1xf32>
    %421 = vector.broadcast %420 : vector<32x1xf32> to vector<32x32xf32>
    %422 = arith.mulf %418, %421 : vector<32x32xf32>
    %423 = arith.truncf %422 : vector<32x32xf32> to vector<32x32xbf16>
    %c0_215 = arith.constant 0 : index
    %c0_216 = arith.constant 0 : index
    %c0_217 = arith.constant 0 : index
    %424 = vector.load %arg5[%c0_215, %c0_216, %c0_217] : memref<9x32x32xbf16, #tpu.memory_space<vmem>>, vector<1x32x32xbf16>
    %425 = vector.shape_cast %424 : vector<1x32x32xbf16> to vector<32x32xbf16>
    %cst_218 = arith.constant dense<0.000000e+00> : vector<32x32xf32>
    %426 = tpu.matmul %423, %425, %cst_218 {dimension_numbers = #tpu.dot_dimension_numbers<[1], [0], [0], [1], [0, 0, 1, 1], [], []>} : vector<32x32xbf16>, vector<32x32xbf16>, vector<32x32xf32> -> vector<32x32xf32>
    %427 = arith.addf %417, %426 : vector<32x32xf32>
    %c4_219 = arith.constant 4 : index
    %c0_220 = arith.constant 0 : index
    %428 = vector.load %arg10[%c4_219, %c0_220] : memref<48x32xf32, #tpu.memory_space<vmem>>, vector<32x32xf32>
    %c1_221 = arith.constant 1 : index
    %c0_222 = arith.constant 0 : index
    %c0_223 = arith.constant 0 : index
    %429 = vector.load %arg2[%c1_221, %c0_222, %c0_223] : memref<9x32x1xf32, #tpu.memory_space<vmem>>, vector<1x32x1xf32>
    %430 = vector.shape_cast %429 : vector<1x32x1xf32> to vector<32x1xf32>
    %431 = vector.broadcast %430 : vector<32x1xf32> to vector<32x32xf32>
    %432 = arith.mulf %428, %431 : vector<32x32xf32>
    %433 = arith.truncf %432 : vector<32x32xf32> to vector<32x32xbf16>
    %c1_224 = arith.constant 1 : index
    %c0_225 = arith.constant 0 : index
    %c0_226 = arith.constant 0 : index
    %434 = vector.load %arg5[%c1_224, %c0_225, %c0_226] : memref<9x32x32xbf16, #tpu.memory_space<vmem>>, vector<1x32x32xbf16>
    %435 = vector.shape_cast %434 : vector<1x32x32xbf16> to vector<32x32xbf16>
    %cst_227 = arith.constant dense<0.000000e+00> : vector<32x32xf32>
    %436 = tpu.matmul %433, %435, %cst_227 {dimension_numbers = #tpu.dot_dimension_numbers<[1], [0], [0], [1], [0, 0, 1, 1], [], []>} : vector<32x32xbf16>, vector<32x32xbf16>, vector<32x32xf32> -> vector<32x32xf32>
    %437 = arith.addf %427, %436 : vector<32x32xf32>
    %c5_228 = arith.constant 5 : index
    %c0_229 = arith.constant 0 : index
    %438 = vector.load %arg10[%c5_228, %c0_229] : memref<48x32xf32, #tpu.memory_space<vmem>>, vector<32x32xf32>
    %c2_230 = arith.constant 2 : index
    %c0_231 = arith.constant 0 : index
    %c0_232 = arith.constant 0 : index
    %439 = vector.load %arg2[%c2_230, %c0_231, %c0_232] : memref<9x32x1xf32, #tpu.memory_space<vmem>>, vector<1x32x1xf32>
    %440 = vector.shape_cast %439 : vector<1x32x1xf32> to vector<32x1xf32>
    %441 = vector.broadcast %440 : vector<32x1xf32> to vector<32x32xf32>
    %442 = arith.mulf %438, %441 : vector<32x32xf32>
    %443 = arith.truncf %442 : vector<32x32xf32> to vector<32x32xbf16>
    %c2_233 = arith.constant 2 : index
    %c0_234 = arith.constant 0 : index
    %c0_235 = arith.constant 0 : index
    %444 = vector.load %arg5[%c2_233, %c0_234, %c0_235] : memref<9x32x32xbf16, #tpu.memory_space<vmem>>, vector<1x32x32xbf16>
    %445 = vector.shape_cast %444 : vector<1x32x32xbf16> to vector<32x32xbf16>
    %cst_236 = arith.constant dense<0.000000e+00> : vector<32x32xf32>
    %446 = tpu.matmul %443, %445, %cst_236 {dimension_numbers = #tpu.dot_dimension_numbers<[1], [0], [0], [1], [0, 0, 1, 1], [], []>} : vector<32x32xbf16>, vector<32x32xbf16>, vector<32x32xf32> -> vector<32x32xf32>
    %447 = arith.addf %437, %446 : vector<32x32xf32>
    %c7_237 = arith.constant 7 : index
    %c0_238 = arith.constant 0 : index
    %448 = vector.load %arg10[%c7_237, %c0_238] : memref<48x32xf32, #tpu.memory_space<vmem>>, vector<32x32xf32>
    %c3_239 = arith.constant 3 : index
    %c0_240 = arith.constant 0 : index
    %c0_241 = arith.constant 0 : index
    %449 = vector.load %arg2[%c3_239, %c0_240, %c0_241] : memref<9x32x1xf32, #tpu.memory_space<vmem>>, vector<1x32x1xf32>
    %450 = vector.shape_cast %449 : vector<1x32x1xf32> to vector<32x1xf32>
    %451 = vector.broadcast %450 : vector<32x1xf32> to vector<32x32xf32>
    %452 = arith.mulf %448, %451 : vector<32x32xf32>
    %453 = arith.truncf %452 : vector<32x32xf32> to vector<32x32xbf16>
    %c3_242 = arith.constant 3 : index
    %c0_243 = arith.constant 0 : index
    %c0_244 = arith.constant 0 : index
    %454 = vector.load %arg5[%c3_242, %c0_243, %c0_244] : memref<9x32x32xbf16, #tpu.memory_space<vmem>>, vector<1x32x32xbf16>
    %455 = vector.shape_cast %454 : vector<1x32x32xbf16> to vector<32x32xbf16>
    %cst_245 = arith.constant dense<0.000000e+00> : vector<32x32xf32>
    %456 = tpu.matmul %453, %455, %cst_245 {dimension_numbers = #tpu.dot_dimension_numbers<[1], [0], [0], [1], [0, 0, 1, 1], [], []>} : vector<32x32xbf16>, vector<32x32xbf16>, vector<32x32xf32> -> vector<32x32xf32>
    %457 = arith.addf %447, %456 : vector<32x32xf32>
    %c8_246 = arith.constant 8 : index
    %c0_247 = arith.constant 0 : index
    %458 = vector.load %arg10[%c8_246, %c0_247] : memref<48x32xf32, #tpu.memory_space<vmem>>, vector<32x32xf32>
    %459 = arith.truncf %458 : vector<32x32xf32> to vector<32x32xbf16>
    %c4_248 = arith.constant 4 : index
    %c0_249 = arith.constant 0 : index
    %c0_250 = arith.constant 0 : index
    %460 = vector.load %arg5[%c4_248, %c0_249, %c0_250] : memref<9x32x32xbf16, #tpu.memory_space<vmem>>, vector<1x32x32xbf16>
    %461 = vector.shape_cast %460 : vector<1x32x32xbf16> to vector<32x32xbf16>
    %cst_251 = arith.constant dense<0.000000e+00> : vector<32x32xf32>
    %462 = tpu.matmul %459, %461, %cst_251 {dimension_numbers = #tpu.dot_dimension_numbers<[1], [0], [0], [1], [0, 0, 1, 1], [], []>} : vector<32x32xbf16>, vector<32x32xbf16>, vector<32x32xf32> -> vector<32x32xf32>
    %463 = arith.addf %457, %462 : vector<32x32xf32>
    %c9_252 = arith.constant 9 : index
    %c0_253 = arith.constant 0 : index
    %464 = vector.load %arg10[%c9_252, %c0_253] : memref<48x32xf32, #tpu.memory_space<vmem>>, vector<32x32xf32>
    %c5_254 = arith.constant 5 : index
    %c0_255 = arith.constant 0 : index
    %c0_256 = arith.constant 0 : index
    %465 = vector.load %arg2[%c5_254, %c0_255, %c0_256] : memref<9x32x1xf32, #tpu.memory_space<vmem>>, vector<1x32x1xf32>
    %466 = vector.shape_cast %465 : vector<1x32x1xf32> to vector<32x1xf32>
    %467 = vector.broadcast %466 : vector<32x1xf32> to vector<32x32xf32>
    %468 = arith.mulf %464, %467 : vector<32x32xf32>
    %469 = arith.truncf %468 : vector<32x32xf32> to vector<32x32xbf16>
    %c5_257 = arith.constant 5 : index
    %c0_258 = arith.constant 0 : index
    %c0_259 = arith.constant 0 : index
    %470 = vector.load %arg5[%c5_257, %c0_258, %c0_259] : memref<9x32x32xbf16, #tpu.memory_space<vmem>>, vector<1x32x32xbf16>
    %471 = vector.shape_cast %470 : vector<1x32x32xbf16> to vector<32x32xbf16>
    %cst_260 = arith.constant dense<0.000000e+00> : vector<32x32xf32>
    %472 = tpu.matmul %469, %471, %cst_260 {dimension_numbers = #tpu.dot_dimension_numbers<[1], [0], [0], [1], [0, 0, 1, 1], [], []>} : vector<32x32xbf16>, vector<32x32xbf16>, vector<32x32xf32> -> vector<32x32xf32>
    %473 = arith.addf %463, %472 : vector<32x32xf32>
    %c11_261 = arith.constant 11 : index
    %c0_262 = arith.constant 0 : index
    %474 = vector.load %arg10[%c11_261, %c0_262] : memref<48x32xf32, #tpu.memory_space<vmem>>, vector<32x32xf32>
    %c6_263 = arith.constant 6 : index
    %c0_264 = arith.constant 0 : index
    %c0_265 = arith.constant 0 : index
    %475 = vector.load %arg2[%c6_263, %c0_264, %c0_265] : memref<9x32x1xf32, #tpu.memory_space<vmem>>, vector<1x32x1xf32>
    %476 = vector.shape_cast %475 : vector<1x32x1xf32> to vector<32x1xf32>
    %477 = vector.broadcast %476 : vector<32x1xf32> to vector<32x32xf32>
    %478 = arith.mulf %474, %477 : vector<32x32xf32>
    %479 = arith.truncf %478 : vector<32x32xf32> to vector<32x32xbf16>
    %c6_266 = arith.constant 6 : index
    %c0_267 = arith.constant 0 : index
    %c0_268 = arith.constant 0 : index
    %480 = vector.load %arg5[%c6_266, %c0_267, %c0_268] : memref<9x32x32xbf16, #tpu.memory_space<vmem>>, vector<1x32x32xbf16>
    %481 = vector.shape_cast %480 : vector<1x32x32xbf16> to vector<32x32xbf16>
    %cst_269 = arith.constant dense<0.000000e+00> : vector<32x32xf32>
    %482 = tpu.matmul %479, %481, %cst_269 {dimension_numbers = #tpu.dot_dimension_numbers<[1], [0], [0], [1], [0, 0, 1, 1], [], []>} : vector<32x32xbf16>, vector<32x32xbf16>, vector<32x32xf32> -> vector<32x32xf32>
    %483 = arith.addf %473, %482 : vector<32x32xf32>
    %c12_270 = arith.constant 12 : index
    %c0_271 = arith.constant 0 : index
    %484 = vector.load %arg10[%c12_270, %c0_271] : memref<48x32xf32, #tpu.memory_space<vmem>>, vector<32x32xf32>
    %c7_272 = arith.constant 7 : index
    %c0_273 = arith.constant 0 : index
    %c0_274 = arith.constant 0 : index
    %485 = vector.load %arg2[%c7_272, %c0_273, %c0_274] : memref<9x32x1xf32, #tpu.memory_space<vmem>>, vector<1x32x1xf32>
    %486 = vector.shape_cast %485 : vector<1x32x1xf32> to vector<32x1xf32>
    %487 = vector.broadcast %486 : vector<32x1xf32> to vector<32x32xf32>
    %488 = arith.mulf %484, %487 : vector<32x32xf32>
    %489 = arith.truncf %488 : vector<32x32xf32> to vector<32x32xbf16>
    %c7_275 = arith.constant 7 : index
    %c0_276 = arith.constant 0 : index
    %c0_277 = arith.constant 0 : index
    %490 = vector.load %arg5[%c7_275, %c0_276, %c0_277] : memref<9x32x32xbf16, #tpu.memory_space<vmem>>, vector<1x32x32xbf16>
    %491 = vector.shape_cast %490 : vector<1x32x32xbf16> to vector<32x32xbf16>
    %cst_278 = arith.constant dense<0.000000e+00> : vector<32x32xf32>
    %492 = tpu.matmul %489, %491, %cst_278 {dimension_numbers = #tpu.dot_dimension_numbers<[1], [0], [0], [1], [0, 0, 1, 1], [], []>} : vector<32x32xbf16>, vector<32x32xbf16>, vector<32x32xf32> -> vector<32x32xf32>
    %493 = arith.addf %483, %492 : vector<32x32xf32>
    %c13_279 = arith.constant 13 : index
    %c0_280 = arith.constant 0 : index
    %494 = vector.load %arg10[%c13_279, %c0_280] : memref<48x32xf32, #tpu.memory_space<vmem>>, vector<32x32xf32>
    %c8_281 = arith.constant 8 : index
    %c0_282 = arith.constant 0 : index
    %c0_283 = arith.constant 0 : index
    %495 = vector.load %arg2[%c8_281, %c0_282, %c0_283] : memref<9x32x1xf32, #tpu.memory_space<vmem>>, vector<1x32x1xf32>
    %496 = vector.shape_cast %495 : vector<1x32x1xf32> to vector<32x1xf32>
    %497 = vector.broadcast %496 : vector<32x1xf32> to vector<32x32xf32>
    %498 = arith.mulf %494, %497 : vector<32x32xf32>
    %499 = arith.truncf %498 : vector<32x32xf32> to vector<32x32xbf16>
    %c8_284 = arith.constant 8 : index
    %c0_285 = arith.constant 0 : index
    %c0_286 = arith.constant 0 : index
    %500 = vector.load %arg5[%c8_284, %c0_285, %c0_286] : memref<9x32x32xbf16, #tpu.memory_space<vmem>>, vector<1x32x32xbf16>
    %501 = vector.shape_cast %500 : vector<1x32x32xbf16> to vector<32x32xbf16>
    %cst_287 = arith.constant dense<0.000000e+00> : vector<32x32xf32>
    %502 = tpu.matmul %499, %501, %cst_287 {dimension_numbers = #tpu.dot_dimension_numbers<[1], [0], [0], [1], [0, 0, 1, 1], [], []>} : vector<32x32xbf16>, vector<32x32xbf16>, vector<32x32xf32> -> vector<32x32xf32>
    %503 = arith.addf %493, %502 : vector<32x32xf32>
    %cst_288 = arith.constant 0.000000e+00 : f32
    %504 = vector.broadcast %cst_288 : f32 to vector<32x32xf32>
    %505 = arith.cmpf oge, %503, %504 : vector<32x32xf32>
    %cst_289 = arith.constant 2.000000e-01 : f32
    %506 = vector.broadcast %cst_289 : f32 to vector<32x32xf32>
    %507 = arith.mulf %506, %503 : vector<32x32xf32>
    %508 = arith.select %505, %503, %507 : vector<32x32xi1>, vector<32x32xf32>
    %509 = arith.mulf %508, %508 : vector<32x32xf32>
    %cst_290 = arith.constant dense<0.000000e+00> : vector<32xf32>
    %510 = vector.multi_reduction <add>, %509, %cst_290 [1] : vector<32x32xf32> to vector<32xf32>
    %511 = vector.shape_cast %510 : vector<32xf32> to vector<32x1xf32>
    %cst_291 = arith.constant 3.200000e+01 : f32
    %512 = vector.broadcast %cst_291 : f32 to vector<32x1xf32>
    %513 = arith.divf %511, %512 : vector<32x1xf32>
    %cst_292 = arith.constant 9.99999993E-9 : f32
    %514 = vector.broadcast %cst_292 : f32 to vector<32x1xf32>
    %515 = arith.addf %513, %514 : vector<32x1xf32>
    %516 = math.rsqrt %515 : vector<32x1xf32>
    %517 = vector.broadcast %516 : vector<32x1xf32> to vector<32x32xf32>
    %518 = arith.mulf %508, %517 : vector<32x32xf32>
    %519 = arith.truncf %518 : vector<32x32xf32> to vector<32x32xbf16>
    %c0_293 = arith.constant 0 : index
    %c0_294 = arith.constant 0 : index
    %520 = vector.load %arg7[%c0_293, %c0_294] : memref<32x128xbf16, #tpu.memory_space<vmem>>, vector<32x128xbf16>
    %cst_295 = arith.constant dense<0.000000e+00> : vector<32x128xf32>
    %521 = tpu.matmul %519, %520, %cst_295 {dimension_numbers = #tpu.dot_dimension_numbers<[1], [0], [0], [1], [0, 0, 1, 1], [], []>} : vector<32x32xbf16>, vector<32x128xbf16>, vector<32x128xf32> -> vector<32x128xf32>
    %c0_296 = arith.constant 0 : index
    %c0_297 = arith.constant 0 : index
    %522 = vector.load %arg8[%c0_296, %c0_297] : memref<1x128xf32, #tpu.memory_space<vmem>>, vector<1x128xf32>
    %523 = vector.broadcast %522 : vector<1x128xf32> to vector<32x128xf32>
    %524 = arith.addf %521, %523 : vector<32x128xf32>
    %c0_298 = arith.constant 0 : index
    %c0_299 = arith.constant 0 : index
    %525 = vector.load %arg9[%c0_298, %c0_299] : memref<32x128xf32, #tpu.memory_space<vmem>>, vector<32x128xf32>
    tpu.vector_store %arg9[%c0_298, %c0_299], %524 {strides = array<i32>} : memref<32x128xf32, #tpu.memory_space<vmem>>, vector<32x128xf32>,
    return
  }
  func.func @transform_0(%arg0: i32) -> (i32, i32) {
    %c0_i32 = arith.constant 0 : i32
    %c0_i32_0 = arith.constant 0 : i32
    %c0_i32_1 = arith.constant 0 : i32
    return %c0_i32, %c0_i32_0 : i32, i32
  }
  func.func @transform_1(%arg0: i32) -> (i32, i32, i32) {
    %c0_i32 = arith.constant 0 : i32
    %c0_i32_0 = arith.constant 0 : i32
    %c0_i32_1 = arith.constant 0 : i32
    %c0_i32_2 = arith.constant 0 : i32
    return %c0_i32, %c0_i32_0, %c0_i32_1 : i32, i32, i32
  }
  func.func @transform_2(%arg0: i32) -> (i32, i32, i32) {
    %c0_i32 = arith.constant 0 : i32
    %c0_i32_0 = arith.constant 0 : i32
    %c0_i32_1 = arith.constant 0 : i32
    %c0_i32_2 = arith.constant 0 : i32
    return %c0_i32, %c0_i32_0, %c0_i32_1 : i32, i32, i32
  }
  func.func @transform_3(%arg0: i32) -> (i32, i32) {
    %c0_i32 = arith.constant 0 : i32
    %c0_i32_0 = arith.constant 0 : i32
    %c0_i32_1 = arith.constant 0 : i32
    return %c0_i32, %c0_i32_0 : i32, i32
  }
  func.func @transform_4(%arg0: i32) -> (i32, i32, i32) {
    %c0_i32 = arith.constant 0 : i32
    %c0_i32_0 = arith.constant 0 : i32
    %c0_i32_1 = arith.constant 0 : i32
    %c0_i32_2 = arith.constant 0 : i32
    return %c0_i32, %c0_i32_0, %c0_i32_1 : i32, i32, i32
  }
  func.func @transform_5(%arg0: i32) -> (i32, i32) {
    %c0_i32 = arith.constant 0 : i32
    %c0_i32_0 = arith.constant 0 : i32
    %c0_i32_1 = arith.constant 0 : i32
    return %c0_i32, %c0_i32_0 : i32, i32
  }
  func.func @transform_6(%arg0: i32) -> (i32, i32) {
    %c0_i32 = arith.constant 0 : i32
    %c0_i32_0 = arith.constant 0 : i32
    %c0_i32_1 = arith.constant 0 : i32
    return %c0_i32, %c0_i32_0 : i32, i32
  }
  func.func @transform_7(%arg0: i32) -> (i32, i32) {
    %c0_i32 = arith.constant 0 : i32
    %c0_i32_0 = arith.constant 0 : i32
    %c0_i32_1 = arith.constant 0 : i32
    return %c0_i32, %c0_i32_0 : i32, i32
  }
  func.func @transform_8(%arg0: i32) -> (i32, i32) {
    %c0_i32 = arith.constant 0 : i32
    %c0_i32_0 = arith.constant 0 : i32
    %c0_i32_1 = arith.constant 0 : i32
    return %c0_i32, %c0_i32_0 : i32, i32
  }
}

</mosaic_0001>

<bundles_post_ra>
// kernel: tpu_custom_call.1
= control target key start
LH: loop header
LB: loop body
LE: loop exit
PB: predicated region body
PF: predicated region fallthrough
CT: control target
= control target key end

     0   :  { %13 = vsyncpa [#allocation4], 0  ;;  %s2888_s0 = inlined_call_operand.vmem [shape: f32[2,24], index: 0, kind: input, shape index: {}]   ;;  %s2889_s1 = inlined_call_operand.vmem [shape: f32[9,32,1], index: 1, kind: input, shape index: {}]   ;;  %s2890_s2 = inlined_call_operand.vmem [shape: bf16[16,24,32], index: 2, kind: input, shape index: {}]   ;;  %s2891_s3 = inlined_call_operand.vmem [shape: f32[16,32], index: 3, kind: input, shape index: {}]   ;;  %s2892_s4 = inlined_call_operand.hbm [shape: bf16[9,32,32], index: 4, kind: input, shape index: {}]   ;;  %s2893_s5 = inlined_call_operand.vmem [shape: f32[1,32], index: 5, kind: input, shape index: {}]   ;;  %s2894_s6 = inlined_call_operand.vmem [shape: bf16[32,128], index: 6, kind: input, shape index: {}]   ;;  %s2895_s7 = inlined_call_operand.vmem [shape: f32[1,128], index: 7, kind: input, shape index: {}]   ;;  %s2896_s8 = inlined_call_operand.hbm [shape: f32[32,128], index: 8, kind: output, shape index: {}]  }
   0x1   :  { %14 = vsyncpa [#allocation5], 0  ;;  %s27_s29 = sshll.u32 %s2892_s4, 4  ;;  %s2214_s30 = smov [#allocation3]   ;;  %s28_s29 = int_to_ptr.hbm [resolvable:$true] %s27_s29 }
   0x2   :  { %s29_s9 = sshll.u32 %s2214_s30, 4  ;;  %s2215_s10 = smov 64   ;;  %s30_s9 = int_to_ptr.vmem [resolvable:$true] %s29_s9 }
   0x3   :  { %s2216_s11 = smov 4  }
   0x4   :  { %35 = dma.hbm_to_vmem [thread:$0]  %s28_s29, 2304, %s30_s9, [#allocation4], %s2215_s10, %s2215_s10, %s2216_s11  }
   0x5   :  { %2210 = dma.done.wait [#allocation4], 2304  }
   0x6   :  { %2211 = vsyncadd [#allocation4], 4294964992  ;;  %vm56_vm0 = vcmask 189440   ;;  %v2275_v0 = vld [vmem:[%s2888_s0] sm:$0x3]  ;;  %v2217_v3 = vmov 24.0  }
   0x7   :  { %v55_v1 = vmul.f32 %v2275_v0, %v2275_v0  ;;  %2116 = vrcp.f32 %v2217_v3  ;;  %v83_v6 = vld [vmem:[%s2890_s2 + $0x8] sm:$0xf]  ;;  %v1803_v7 = vld [vmem:[%s2890_s2 + $0x14] sm:$0xf]  ;;  %v1827_v8 = vld [vmem:[%s2890_s2 + $0x38] sm:$0xf] }
   0x8   :  { %v91_v9 = vunpack.c.l.b16 %v83_v6  ;;  %v159_v10 = vunpack.c.l.b16 %v1803_v7  ;;  %v318_v11 = vunpack.c.l.b16 %v1827_v8  ;;  %v1835_v12 = vld [vmem:[%s2890_s2 + $0x44] sm:$0xf]  ;;  %vm99_vm1 = vcmask 1043456   ;;  %v2050_v25 = vld [vmem:[%s2890_s2 + $0xc] sm:$0xff]  ;;  %v2054_v27 = vld [vmem:[%s2890_s2 + $0x3c] sm:$0xff]  ;;  %s2221_s27 = smov [#allocation6]  }
   0x9   :  { %v57_v2 = vsel %vm56_vm0, %v55_v1, 0.0  ;;  %v371_v13 = vunpack.c.l.b16 %v1835_v12  ;;  %v2049_v24 = vld [vmem:[%s2890_s2] sm:$0xff]  ;;  %v2053_v26 = vld [vmem:[%s2890_s2 + $0x30] sm:$0xff]  ;;  %v1859_v29 = vld [vmem:[%s2890_s2 + $0x68] sm:$0xf]  ;;  %vm95_vm6 = vcmask 195584  }
   0xa   :  { %58 = vadd.xlane.f32.xlu0 %v57_v2  ;;  %v93_v14 = vpack.c.b16 %v91_v9, %v91_v9  ;;  %v161_v15 = vpack.c.b16 %v159_v10, %v159_v10  ;;  %v320_v16 = vpack.c.b16 %v318_v11, %v318_v11  ;;  %v1867_v30 = vld [vmem:[%s2890_s2 + $0x74] sm:$0xf]  ;;  %v1811_v31 = vld [vmem:[%s2890_s2 + $0x20] sm:$0xf]  ;;  %v530_v32 = vunpack.c.l.b16 %v1859_v29  ;;  %v1819_v35 = vld [vmem:[%s2890_s2 + $0x2c] sm:$0xf] }
   0xb   :  { %v373_v18 = vpack.c.b16 %v371_v13, %v371_v13  ;;  %v583_v33 = vunpack.c.l.b16 %v1867_v30  ;;  %v212_v34 = vunpack.c.l.b16 %v1811_v31  ;;  %v265_v37 = vunpack.c.l.b16 %v1819_v35  ;;  %v2057_v47 = vld [vmem:[%s2890_s2 + $0x60] sm:$0xff]  ;;  %v2058_v48 = vld [vmem:[%s2890_s2 + $0x6c] sm:$0xff]  ;;  %v2051_v51 = vld [vmem:[%s2890_s2 + $0x18] sm:$0xff]  ;;  %s1781_s28 = sshll.u32 %s2221_s27, 4  ;;  %s1783_s9 = sshll.u32 %s2896_s8, 4  ;;  %s1782_s28 = int_to_ptr.vmem [resolvable:$true] %s1781_s28  ;;  %s1784_s9 = int_to_ptr.hbm [resolvable:$true] %s1783_s9 }
   0xc   :  { %v101_v19 = vsel %vm99_vm1, %v93_v14, 0  ;;  %v164_v20 = vsel %vm99_vm1, %v161_v15, 0  ;;  %v323_v21 = vsel %vm99_vm1, %v320_v16, 0  ;;  %v532_v38 = vpack.c.b16 %v530_v32, %v530_v32  ;;  %v2052_v52 = vld [vmem:[%s2890_s2 + $0x24] sm:$0xff]  ;;  %v1891_v56 = vld [vmem:[%s2890_s2 + $0x98] sm:$0xf] }
   0xd   :  { %v2117_v4 = vpop.eup %2116  ;;  %109 = vmatpush.bf16.msra.mxu2 %v101_v19  ;;  %172 = vmatpush.bf16.msra.mxu3 %v164_v20  ;;  %v376_v22 = vsel %vm99_vm1, %v373_v18, 0  ;;  %v585_v39 = vpack.c.b16 %v583_v33, %v583_v33  ;;  %v214_v40 = vpack.c.b16 %v212_v34, %v212_v34  ;;  %v267_v42 = vpack.c.b16 %v265_v37, %v265_v37  ;;  %v1843_v57 = vld [vmem:[%s2890_s2 + $0x50] sm:$0xf]  ;;  %v1851_v59 = vld [vmem:[%s2890_s2 + $0x5c] sm:$0xf]  ;;  %v2055_v15 = vld [vmem:[%s2890_s2 + $0x48] sm:$0xff] }
   0xe   :  { %v61_v5 = vmul.f32 24.0, %v2117_v4  ;;  %331 = vmatpush.bf16.msra.mxu0 %v323_v21  ;;  %384 = vmatpush.bf16.msra.mxu1 %v376_v22  ;;  %vm65_vm2 = vweird.f32 %v2117_v4  ;;  %v535_v44 = vsel %vm99_vm1, %v532_v38, 0  ;;  %v1899_v60 = vld [vmem:[%s2890_s2 + $0xa4] sm:$0xf]  ;;  %v742_v62 = vunpack.c.l.b16 %v1891_v56  ;;  %v2056_v16 = vld [vmem:[%s2890_s2 + $0x54] sm:$0xff]  ;;  %v953_v37 = vld [vmem:[%s2889_s1 + $0x8] sm:$0xff] }
   0xf   :  { %v588_v45 = vsel %vm99_vm1, %v585_v39, 0  ;;  %v217_v46 = vsel %vm99_vm1, %v214_v40, 0  ;;  %v270_v49 = vsel %vm99_vm1, %v267_v42, 0  ;;  %v424_v63 = vunpack.c.l.b16 %v1843_v57  ;;  %v1875_v18 = vld [vmem:[%s2890_s2 + $0x80] sm:$0xf]  ;;  %v2063_v38 = vld [vmem:[%s2890_s2 + $0xa8] sm:$0xff] }
  0x10   :  { %v62_v17 = vsub.f32 1.0, %v61_v5  ;;  %v477_v1 = vunpack.c.l.b16 %v1851_v59  ;;  %v795_v2 = vunpack.c.l.b16 %v1899_v60  ;;  %v744_v5 = vpack.c.b16 %v742_v62, %v742_v62  ;;  %v1883_v19 = vld [vmem:[%s2890_s2 + $0x8c] sm:$0xf]  ;;  %v1915_v29 = vld [vmem:[%s2890_s2 + $0xbc] sm:$0xf]  ;;  %v2064_v39 = vld [vmem:[%s2890_s2 + $0xb4] sm:$0xff] }
  0x11   :  { %110 = vmatpush.bf16.msra.mxu2 %v2049_v24  ;;  %173 = vmatpush.bf16.msra.mxu3 %v2050_v25  ;;  %v426_v6 = vpack.c.b16 %v424_v63, %v424_v63  ;;  %v636_v20 = vunpack.c.l.b16 %v1875_v18  ;;  %v689_v21 = vunpack.c.l.b16 %v1883_v19  ;;  %v901_v31 = vunpack.c.l.b16 %v1915_v29  ;;  %v955_v42 = vld [vmem:[%s2889_s1 + $0x18] sm:$0xff]  ;;  %v2105_v18 = vld [vmem:[%s2891_s3 + $0x3] ss:$0 sm:$0xff]  ;;  %s2223_s10 = smov 8  }
  0x12   :  { %v63_v23 = vmul.f32 %v2117_v4, %v62_v17  ;;  %332 = vmatpush.bf16.msra.mxu0 %v2053_v26  ;;  %385 = vmatpush.bf16.msra.mxu1 %v2054_v27  ;;  %v479_v8 = vpack.c.b16 %v477_v1, %v477_v1  ;;  %v797_v9 = vpack.c.b16 %v795_v2, %v795_v2  ;;  %v747_v11 = vsel %vm99_vm1, %v744_v5, 0  ;;  %v2062_v17 = vld [vmem:[%s2890_s2 + $0x9c] sm:$0xff]  ;;  %v2060_v27 = vld [vmem:[%s2890_s2 + $0x84] sm:$0xff] }
  0x13   :  { %v429_v12 = vsel %vm99_vm1, %v426_v6, 0  ;;  %v638_v22 = vpack.c.b16 %v636_v20, %v636_v20  ;;  %v2059_v26 = vld [vmem:[%s2890_s2 + $0x78] sm:$0xff]  ;;  %v903_v33 = vpack.c.b16 %v901_v31, %v901_v31  ;;  %v2218_v40 = vmov 0  }
  0x14   :  { %v64_v28 = vadd.f32 %v2117_v4, %v63_v23  ;;  %v482_v13 = vsel %vm99_vm1, %v479_v8, 0  ;;  %v800_v14 = vsel %vm99_vm1, %v797_v9, 0  ;;  %v691_v23 = vpack.c.b16 %v689_v21, %v689_v21  ;;  %2095 = vset.pattern.permute.xlu2 %v2218_v40  ;;  %2096 = vset.pattern.permute.xlu0 %v2218_v40 }
  0x15   :  { %225 = vmatpush.bf16.msrb.mxu2 %v217_v46  ;;  %278 = vmatpush.bf16.msrb.mxu3 %v270_v49  ;;  %v641_v24 = vsel %vm99_vm1, %v638_v22, 0  ;;  %v906_v35 = vsel %vm99_vm1, %v903_v33, 0  ;;  %v2100_v49 = vld [vmem:[%s2891_s3] ss:$0 sm:$0xff]  ;;  %vm120_vm9 = vcmask 254976  }
  0x16   :  { %v66_v36 = vsel %vm65_vm2, %v2117_v4, %v64_v28  ;;  %543 = vmatpush.bf16.msrb.mxu0 %v535_v44  ;;  %596 = vmatpush.bf16.msrb.mxu1 %v588_v45  ;;  %v694_v25 = vsel %vm99_vm1, %v691_v23, 0  ;;  %v1907_v28 = vld [vmem:[%s2890_s2 + $0xb0] sm:$0xf]  ;;  %v2099_v44 = vld [vmem:[%s2891_s3 + $0x5] ss:$0 sm:$0xff] }
  0x17   :  { %v848_v30 = vunpack.c.l.b16 %v1907_v28  ;;  %2097 = vset.pattern.permute.xlu1 %v2218_v40 }
  0x19   :  { %226 = vmatpush.bf16.msrb.mxu2 %v2051_v51  ;;  %279 = vmatpush.bf16.msrb.mxu3 %v2052_v52  ;;  %v850_v32 = vpack.c.b16 %v848_v30, %v848_v30 }
  0x1a   :  { %544 = vmatpush.bf16.msrb.mxu0 %v2057_v47  ;;  %597 = vmatpush.bf16.msrb.mxu1 %v2058_v48 }
  0x1b   :  { %v853_v34 = vsel %vm99_vm1, %v850_v32, 0 }
  0x1e   :  { %963 = vperm.xlu0 %2096, %v953_v37  }
  0x7d   :  { %v59_v41 = vpop.xlane.xlu0 %58 }
  0x7e   :  { %v67_v43 = vmul.f32 %v66_v36, %v59_v41  ;;  %v952_v36 = vld [vmem:[%s2889_s1] sm:$0xff]  ;;  %v954_v41 = vld [vmem:[%s2889_s1 + $0x10] sm:$0xff] }
  0x7f   :  { %958 = vperm.xlu2 %2095, %v952_v36   ;;  %968 = vperm.xlu1 %2097, %v954_v41   ;;  %v2106_v41 = vld [vmem:[%s2891_s3 + $0xc] ss:$0 sm:$0xff] }
  0x80   :  { %v68_v50 = vadd.f32 1e-08, %v67_v43  ;;  %v2098_v43 = vld [vmem:[%s2891_s3 + $0x4] ss:$0 sm:$0xff] }
  0x82   :  { %2118 = vrsqrt.f32 %v68_v50  ;;  %vm75_vm4 = vweird.f32 %v68_v50 }
  0x87   :  { %973 = vperm.xlu2 %2095, %v955_v42   ;;  %v2107_v42 = vld [vmem:[%s2891_s3 + $0xd] ss:$0 sm:$0xff] }
  0x88   :  { %v2119_v53 = vpop.eup %2118 }
  0x89   :  { %v70_v54 = vmul.f32 %v2119_v53, %v68_v50  ;;  %vm76_vm3 = vweird.f32 %v2119_v53  ;;  %v2101_v50 = vld [vmem:[%s2891_s3 + $0x1] ss:$0 sm:$0xff] }
  0x8a   :  { %vm77_vm5 = vmor %vm75_vm4, %vm76_vm3 }
  0x8b   :  { %v71_v55 = vmul.f32 %v2119_v53, %v70_v54 }
  0x8d   :  { %v72_v58 = vmul.f32 0.5, %v71_v55 }
  0x8f   :  { %v73_v61 = vsub.f32 1.5, %v72_v58 }
  0x91   :  { %v74_v3 = vmul.f32 %v2119_v53, %v73_v61 }
  0x93   :  { %v78_v4 = vsel %vm77_vm5, %v2119_v53, %v74_v3 }
  0x94   :  { %v79_v7 = vmul.f32 %v78_v4, %v2275_v0  ;;  %v2061_v0 = vld [vmem:[%s2890_s2 + $0x90] sm:$0xff] }
  0x96   :  { %v2348_v10 = vpack.c.bf16 %v79_v7, %v79_v7 }
  0x98   :  { %1800 = vmatmul.msk.bf16.vlgmr.msra.gmra.mxu2 %vm95_vm6, %v2348_v10  ;;  %1808 = vmatmul.msk.bf16.vlgmr.msra.gmra.mxu3 %vm95_vm6, %v2348_v10 }
  0x99   :  { %1832 = vmatmul.msk.bf16.vlgmr.msra.gmra.mxu0 %vm95_vm6, %v2348_v10  ;;  %1840 = vmatmul.msk.bf16.vlgmr.msra.gmra.mxu1 %vm95_vm6, %v2348_v10 }
  0x9a   :  { %755 = vmatpush.bf16.msra.mxu0 %v747_v11  ;;  %437 = vmatpush.bf16.msra.mxu2 %v429_v12  ;;  %v2103_v11 = vld [vmem:[%s2891_s3 + $0x9] ss:$0 sm:$0xff] }
  0x9b   :  { %490 = vmatpush.bf16.msra.mxu3 %v482_v13  ;;  %808 = vmatpush.bf16.msra.mxu1 %v800_v14 }
  0x9e   :  { %756 = vmatpush.bf16.msra.mxu0 %v2061_v0  ;;  %438 = vmatpush.bf16.msra.mxu2 %v2055_v15 }
  0x9f   :  { %491 = vmatpush.bf16.msra.mxu3 %v2056_v16  ;;  %809 = vmatpush.bf16.msra.mxu1 %v2062_v17  ;;  %v2104_v17 = vld [vmem:[%s2891_s3 + $0x2] ss:$0 sm:$0xff] }
  0xa8   :  { %1816 = vmatmul.msk.bf16.vlgmr.msrb.gmra.mxu2 %vm95_vm6, %v2348_v10  ;;  %1824 = vmatmul.msk.bf16.vlgmr.msrb.gmra.mxu3 %vm95_vm6, %v2348_v10 }
  0xa9   :  { %1864 = vmatmul.msk.bf16.vlgmr.msrb.gmra.mxu0 %vm95_vm6, %v2348_v10  ;;  %1872 = vmatmul.msk.bf16.vlgmr.msrb.gmra.mxu1 %vm95_vm6, %v2348_v10 }
  0xaa   :  { %649 = vmatpush.bf16.msrb.mxu2 %v641_v24  ;;  %702 = vmatpush.bf16.msrb.mxu3 %v694_v25 }
  0xae   :  { %650 = vmatpush.bf16.msrb.mxu2 %v2059_v26  ;;  %703 = vmatpush.bf16.msrb.mxu3 %v2060_v27 }
  0xb8   :  { %1848 = vmatmul.msk.bf16.vlgmr.msra.gmra.mxu2 %vm95_vm6, %v2348_v10  ;;  %1856 = vmatmul.msk.bf16.vlgmr.msra.gmra.mxu3 %vm95_vm6, %v2348_v10 }
  0xb9   :  { %1896 = vmatmul.msk.bf16.vlgmr.msra.gmra.mxu0 %vm95_vm6, %v2348_v10  ;;  %1904 = vmatmul.msk.bf16.vlgmr.msra.gmra.mxu1 %vm95_vm6, %v2348_v10 }
  0xba   :  { %861 = vmatpush.bf16.msra.mxu2 %v853_v34  ;;  %914 = vmatpush.bf16.msra.mxu3 %v906_v35 }
  0xbe   :  { %862 = vmatpush.bf16.msra.mxu2 %v2063_v38  ;;  %915 = vmatpush.bf16.msra.mxu3 %v2064_v39 }
  0xc8   :  { %1880 = vmatmul.msk.bf16.vlgmr.msrb.gmra.mxu2 %vm95_vm6, %v2348_v10  ;;  %1888 = vmatmul.msk.bf16.vlgmr.msrb.gmra.mxu3 %vm95_vm6, %v2348_v10 }
  0xd8   :  { %1912 = vmatmul.msk.bf16.vlgmr.msra.gmra.mxu2 %vm95_vm6, %v2348_v10  ;;  %1920 = vmatmul.msk.bf16.vlgmr.msra.gmra.mxu3 %vm95_vm6, %v2348_v10  ;;  %v2102_v10 = vld [vmem:[%s2891_s3 + $0x8] ss:$0 sm:$0xff] }
 0x116   :  { %v334_v45 = vpop.f32.mrf.mxu0  ;;  %v387_v46 = vpop.f32.mrf.mxu1 }
 0x117   :  { %v335_v47 = vadd.f32 %v2098_v43, %v334_v45  ;;  %v388_v48 = vadd.f32 %v2099_v44, %v387_v46 }
 0x119   :  { %vm338_vm7 = vcmp.ge.f32.partialorder %v335_v47, 0.0  ;;  %v339_v51 = vmul.f32 0.2, %v335_v47  ;;  %vm391_vm8 = vcmp.ge.f32.partialorder %v388_v48, 0.0  ;;  %v392_v52 = vmul.f32 0.2, %v388_v48 }
 0x11b   :  { %v112_v53 = vpop.f32.mrf.mxu2  ;;  %v175_v54 = vpop.f32.mrf.mxu3  ;;  %v2450_v55 = vsel %vm391_vm8, %v388_v48, %v392_v52  ;;  %v2452_v56 = vsel %vm338_vm7, %v335_v47, %v339_v51  ;;  %vm47_vm7 = vcmask 261120  }
 0x11c   :  { %v113_v57 = vadd.f32 %v2100_v49, %v112_v53  ;;  %v176_v58 = vadd.f32 %v2101_v50, %v175_v54  ;;  %v394_v59 = vmul.f32 %v2450_v55, %v2450_v55  ;;  %v341_v60 = vmul.f32 %v2452_v56, %v2452_v56  ;;  %v2108_v49 = vld [vmem:[%s2891_s3 + $0x6] ss:$0 sm:$0xff]  ;;  %v2109_v50 = vld [vmem:[%s2891_s3 + $0x7] ss:$0 sm:$0xff] }
 0x11e   :  { %vm116_vm10 = vcmp.ge.f32.partialorder %v113_v57, 0.0  ;;  %v117_v61 = vmul.f32 0.2, %v113_v57  ;;  %vm179_vm11 = vcmp.ge.f32.partialorder %v176_v58, 0.0  ;;  %v180_v62 = vmul.f32 0.2, %v176_v58  ;;  %v336_v63 = vpop.f32.mrf.mxu0  ;;  %v389_v1 = vpop.f32.mrf.mxu1 }
 0x11f   :  { %v395_v2 = vsel %vm120_vm9, %v394_v59, 0.0  ;;  %v342_v3 = vsel %vm120_vm9, %v341_v60, 0.0 }
 0x120   :  { %396 = vadd.xlane.f32.xlu0 %v395_v2  ;;  %343 = vadd.xlane.f32.xlu2 %v342_v3  ;;  %v2460_v4 = vsel %vm179_vm11, %v176_v58, %v180_v62  ;;  %v2462_v5 = vsel %vm116_vm10, %v113_v57, %v117_v61 }
 0x121   :  { %v182_v6 = vmul.f32 %v2460_v4, %v2460_v4  ;;  %v119_v12 = vmul.f32 %v2462_v5, %v2462_v5 }
 0x123   :  { %v114_v7 = vpop.f32.mrf.mxu2  ;;  %v177_v8 = vpop.f32.mrf.mxu3  ;;  %v183_v9 = vsel %vm120_vm9, %v182_v6, 0.0  ;;  %v121_v16 = vsel %vm120_vm9, %v119_v12, 0.0 }
 0x124   :  { %184 = vadd.xlane.f32.xlu1 %v183_v9 }
 0x126   :  { %v546_v13 = vpop.f32.mrf.mxu0  ;;  %v599_v14 = vpop.f32.mrf.mxu1 }
 0x127   :  { %v547_v0 = vadd.f32 %v2102_v10, %v546_v13  ;;  %v600_v15 = vadd.f32 %v2103_v11, %v599_v14 }
 0x128   :  { %122 = vadd.xlane.f32.xlu0 %v121_v16  ;;  %v2111_v16 = vld [vmem:[%s2891_s3 + $0xb] ss:$0 sm:$0xff] }
 0x129   :  { %vm550_vm12 = vcmp.ge.f32.partialorder %v547_v0, 0.0  ;;  %v551_v19 = vmul.f32 0.2, %v547_v0  ;;  %vm603_vm13 = vcmp.ge.f32.partialorder %v600_v15, 0.0  ;;  %v604_v20 = vmul.f32 0.2, %v600_v15 }
 0x12b   :  { %v228_v21 = vpop.f32.mrf.mxu2  ;;  %v281_v22 = vpop.f32.mrf.mxu3  ;;  %v2482_v23 = vsel %vm603_vm13, %v600_v15, %v604_v20  ;;  %v2484_v24 = vsel %vm550_vm12, %v547_v0, %v551_v19  ;;  %v2110_v15 = vld [vmem:[%s2891_s3 + $0xa] ss:$0 sm:$0xff] }
 0x12c   :  { %v229_v25 = vadd.f32 %v2104_v17, %v228_v21  ;;  %v282_v26 = vadd.f32 %v2105_v18, %v281_v22  ;;  %v606_v27 = vmul.f32 %v2482_v23, %v2482_v23  ;;  %v553_v28 = vmul.f32 %v2484_v24, %v2484_v24 }
 0x12e   :  { %vm232_vm14 = vcmp.ge.f32.partialorder %v229_v25, 0.0  ;;  %v233_v29 = vmul.f32 0.2, %v229_v25  ;;  %vm285_vm15 = vcmp.ge.f32.partialorder %v282_v26, 0.0  ;;  %v286_v30 = vmul.f32 0.2, %v282_v26  ;;  %v548_v31 = vpop.f32.mrf.mxu0  ;;  %v601_v32 = vpop.f32.mrf.mxu1 }
 0x12f   :  { %v607_v33 = vsel %vm120_vm9, %v606_v27, 0.0  ;;  %v554_v34 = vsel %vm120_vm9, %v553_v28, 0.0 }
 0x130   :  { %608 = vadd.xlane.f32.xlu1 %v607_v33  ;;  %555 = vadd.xlane.f32.xlu0 %v554_v34  ;;  %v2492_v35 = vsel %vm285_vm15, %v282_v26, %v286_v30  ;;  %v2494_v36 = vsel %vm232_vm14, %v229_v25, %v233_v29  ;;  %v2112_v33 = vld [vmem:[%s2891_s3 + $0xe] ss:$0 sm:$0xff] }
 0x131   :  { %v288_v37 = vmul.f32 %v2492_v35, %v2492_v35  ;;  %v235_v43 = vmul.f32 %v2494_v36, %v2494_v36 }
 0x133   :  { %v230_v38 = vpop.f32.mrf.mxu2  ;;  %v283_v39 = vpop.f32.mrf.mxu3  ;;  %v289_v40 = vsel %vm120_vm9, %v288_v37, 0.0  ;;  %v236_v48 = vsel %vm120_vm9, %v235_v43, 0.0 }
 0x134   :  { %290 = vadd.xlane.f32.xlu2 %v289_v40  ;;  %v1946_v40 = vld [vmem:[%s2889_s1 + $0x48] sm:$0xff] }
 0x136   :  { %v758_v44 = vpop.f32.mrf.mxu0  ;;  %v811_v45 = vpop.f32.mrf.mxu1 }
 0x137   :  { %v759_v46 = vadd.f32 %v2106_v41, %v758_v44  ;;  %v812_v47 = vadd.f32 %v2107_v42, %v811_v45 }
 0x138   :  { %237 = vadd.xlane.f32.xlu1 %v236_v48  ;;  %v1959_v48 = vld [vmem:[%s2889_s1 + $0x60] sm:$0xff] }
 0x139   :  { %vm762_vm0 = vcmp.ge.f32.partialorder %v759_v46, 0.0  ;;  %v763_v51 = vmul.f32 0.2, %v759_v46  ;;  %vm815_vm1 = vcmp.ge.f32.partialorder %v812_v47, 0.0  ;;  %v816_v52 = vmul.f32 0.2, %v812_v47 }
 0x13b   :  { %v440_v53 = vpop.f32.mrf.mxu2  ;;  %v493_v54 = vpop.f32.mrf.mxu3  ;;  %v2514_v57 = vsel %vm815_vm1, %v812_v47, %v816_v52  ;;  %v2516_v58 = vsel %vm762_vm0, %v759_v46, %v763_v51  ;;  %v1960_v46 = vld [vmem:[%s2889_s1 + $0x68] sm:$0xff]  ;;  %v1945_v47 = vld [vmem:[%s2889_s1 + $0x40] sm:$0xff]  ;;  %v2220_v51 = vmov 32.0  }
 0x13c   :  { %v441_v59 = vadd.f32 %v2108_v49, %v440_v53  ;;  %v494_v60 = vadd.f32 %v2109_v50, %v493_v54  ;;  %v818_v61 = vmul.f32 %v2514_v57, %v2514_v57  ;;  %v765_v62 = vmul.f32 %v2516_v58, %v2516_v58  ;;  %v1931_v50 = vld [vmem:[%s2889_s1 + $0x20] sm:$0xff]  ;;  %v1932_v52 = vld [vmem:[%s2889_s1 + $0x28] sm:$0xff]  ;;  %v1948_v53 = vld [vmem:[%s2889_s1 + $0x58] sm:$0xff] }
 0x13d   :  { %v2219_v49 = vmov 0.0   ;;  %2120 = vrcp.f32 %v2220_v51 }
 0x13e   :  { %vm444_vm2 = vcmp.ge.f32.partialorder %v441_v59, 0.0  ;;  %v445_v63 = vmul.f32 0.2, %v441_v59  ;;  %vm497_vm3 = vcmp.ge.f32.partialorder %v494_v60, 0.0  ;;  %v498_v1 = vmul.f32 0.2, %v494_v60  ;;  %v760_v2 = vpop.f32.mrf.mxu0  ;;  %v813_v3 = vpop.f32.mrf.mxu1 }
 0x13f   :  { %v819_v6 = vsel %vm120_vm9, %v818_v61, 0.0  ;;  %v766_v7 = vsel %vm120_vm9, %v765_v62, 0.0  ;;  %49 = vst.msk [vmem:[#allocation2 + $0x8] sm:$0xff] %vm47_vm7, %v2219_v49  ;;  %v1961_v61 = vld [vmem:[%s2889_s1 + $0x70] sm:$0xff] }
 0x140   :  { %820 = vadd.xlane.f32.xlu2 %v819_v6  ;;  %767 = vadd.xlane.f32.xlu1 %v766_v7  ;;  %v2524_v8 = vsel %vm497_vm3, %v494_v60, %v498_v1  ;;  %v2526_v9 = vsel %vm444_vm2, %v441_v59, %v445_v63  ;;  %51 = vst.msk [vmem:[#allocation2 + $0x18] sm:$0xff] %vm47_vm7, %v2219_v49  ;;  %v2113_v59 = vld [vmem:[%s2891_s3 + $0xf] ss:$0 sm:$0xff]  ;;  %v2588_v60 = vpop.permute.xlu2 %958  ;;  %v1933_v1 = vld [vmem:[%s2889_s1 + $0x30] sm:$0xff]  ;;  %v2598_v7 = vpop.permute.xlu0 %963  ;;  %vm146_vm2 = vcmask 254977  }
 0x141   :  { %v500_v12 = vmul.f32 %v2524_v8, %v2524_v8  ;;  %v447_v13 = vmul.f32 %v2526_v9, %v2526_v9  ;;  %48 = vst.msk [vmem:[#allocation2] sm:$0xff] %vm47_vm7, %v2219_v49 }
 0x142   :  { %50 = vst.msk [vmem:[#allocation2 + $0x10] sm:$0xff] %vm47_vm7, %v2219_v49 }
 0x143   :  { %v442_v10 = vpop.f32.mrf.mxu2  ;;  %v495_v11 = vpop.f32.mrf.mxu3  ;;  %v501_v14 = vsel %vm120_vm9, %v500_v12, 0.0  ;;  %v448_v0 = vsel %vm120_vm9, %v447_v13, 0.0  ;;  %52 = vst.msk [vmem:[#allocation2 + $0x20] sm:$0xff] %vm47_vm7, %v2219_v49  ;;  %v1998_v13 = vld [vmem:[%s2889_s1 + $0xc8] sm:$0xff] }
 0x144   :  { %53 = vst.msk [vmem:[#allocation2 + $0x28] sm:$0xff] %vm47_vm7, %v2219_v49  ;;  %v2121_v54 = vpop.eup %2120  ;;  %v1934_v10 = vld [vmem:[%s2889_s1 + $0x38] sm:$0xff] }
 0x145   :  { %v125_v62 = vmul.f32 32.0, %v2121_v54  ;;  %vm129_vm10 = vweird.f32 %v2121_v54 }
 0x147   :  { %v126_v2 = vsub.f32 1.0, %v125_v62 }
 0x148   :  { %502 = vadd.xlane.f32.xlu2 %v501_v14  ;;  %449 = vadd.xlane.f32.xlu1 %v448_v0  ;;  %v2596_v6 = vpop.permute.xlu2 %973 }
 0x149   :  { %v127_v11 = vmul.f32 %v2121_v54, %v126_v2 }
 0x14b   :  { %v652_v17 = vpop.f32.mrf.mxu2  ;;  %v705_v18 = vpop.f32.mrf.mxu3  ;;  %v128_v14 = vadd.f32 %v2121_v54, %v127_v11 }
 0x14c   :  { %v653_v19 = vadd.f32 %v2110_v15, %v652_v17  ;;  %v706_v20 = vadd.f32 %v2111_v16, %v705_v18  ;;  %v2610_v15 = vpop.permute.xlu1 %968  ;;  %v2011_v17 = vld [vmem:[%s2889_s1 + $0xe0] sm:$0xff] }
 0x14d   :  { %v2612_v16 = vsel %vm129_vm10, %v2121_v54, %v128_v14 }
 0x14e   :  { %vm656_vm4 = vcmp.ge.f32.partialorder %v653_v19, 0.0  ;;  %v657_v21 = vmul.f32 0.2, %v653_v19  ;;  %vm709_vm5 = vcmp.ge.f32.partialorder %v706_v20, 0.0  ;;  %v710_v22 = vmul.f32 0.2, %v706_v20 }
 0x150   :  { %v2540_v25 = vsel %vm656_vm4, %v653_v19, %v657_v21  ;;  %v2542_v26 = vsel %vm709_vm5, %v706_v20, %v710_v22 }
 0x151   :  { %v659_v27 = vmul.f32 %v2540_v25, %v2540_v25  ;;  %v712_v28 = vmul.f32 %v2542_v26, %v2542_v26 }
 0x153   :  { %v654_v29 = vpop.f32.mrf.mxu2  ;;  %v707_v30 = vpop.f32.mrf.mxu3  ;;  %v660_v31 = vsel %vm120_vm9, %v659_v27, 0.0  ;;  %v713_v32 = vsel %vm120_vm9, %v712_v28, 0.0  ;;  %v1983_v27 = vld [vmem:[%s2889_s1 + $0xa0] sm:$0xff] }
 0x154   :  { %661 = vadd.xlane.f32.xlu2 %v660_v31  ;;  %714 = vadd.xlane.f32.xlu0 %v713_v32  ;;  %v1984_v32 = vld [vmem:[%s2889_s1 + $0xa8] sm:$0xff] }
 0x15b   :  { %v864_v34 = vpop.f32.mrf.mxu2  ;;  %v917_v37 = vpop.f32.mrf.mxu3 }
 0x15c   :  { %v865_v38 = vadd.f32 %v2112_v33, %v864_v34  ;;  %v918_v63 = vadd.f32 %v2113_v59, %v917_v37 }
 0x15e   :  { %vm868_vm6 = vcmp.ge.f32.partialorder %v865_v38, 0.0  ;;  %v869_v39 = vmul.f32 0.2, %v865_v38  ;;  %v922_v3 = vmul.f32 0.2, %v918_v63  ;;  %vm921_vm8 = vcmp.ge.f32.partialorder %v918_v63, 0.0 }
 0x160   :  { %v2556_v41 = vsel %vm868_vm6, %v865_v38, %v869_v39  ;;  %v2603_v12 = vsel %vm921_vm8, %v918_v63, %v922_v3  ;;  %v2026_v38 = vld [vmem:[%s2889_s1 + $0x108] sm:$0xff]  ;;  %v2013_v63 = vld [vmem:[%s2889_s1 + $0xf0] sm:$0xff] }
 0x161   :  { %1124 = vperm.xlu1 %2097, %v1946_v40   ;;  %v871_v42 = vmul.f32 %v2556_v41, %v2556_v41  ;;  %v924_v0 = vmul.f32 %v2603_v12, %v2603_v12 }
 0x163   :  { %v866_v43 = vpop.f32.mrf.mxu2  ;;  %v919_v44 = vpop.f32.mrf.mxu3  ;;  %v872_v45 = vsel %vm120_vm9, %v871_v42, 0.0  ;;  %v925_v18 = vsel %vm120_vm9, %v924_v0, 0.0  ;;  %vm144_vm9 = vcmask 253952  }
 0x164   :  { %873 = vadd.xlane.f32.xlu0 %v872_v45 }
 0x169   :  { %1205 = vperm.xlu1 %2097, %v1960_v46   ;;  %v1999_v46 = vld [vmem:[%s2889_s1 + $0xd0] sm:$0xff] }
 0x16c   :  { %1119 = vperm.xlu2 %2095, %v1945_v47  }
 0x174   :  { %1200 = vperm.xlu2 %2095, %v1959_v48  }
 0x178   :  { %1038 = vperm.xlu0 %2096, %v1931_v50  }
 0x17c   :  { %1043 = vperm.xlu2 %2095, %v1932_v52  }
 0x180   :  { %1134 = vperm.xlu0 %2096, %v1948_v53  }
 0x184   :  { %1210 = vperm.xlu2 %2095, %v1961_v61  }
 0x188   :  { %1048 = vperm.xlu0 %2096, %v1933_v1  }
 0x18c   :  { %1053 = vperm.xlu2 %2095, %v1934_v10  }
 0x190   :  { %1419 = vperm.xlu0 %2096, %v1998_v13  }
 0x193   :  { %v344_v19 = vpop.xlane.xlu2 %343  ;;  %926 = vadd.xlane.f32.xlu1 %v925_v18  ;;  %v397_v20 = vpop.xlane.xlu0 %396 }
 0x194   :  { %v345_v21 = vmul.f32 %v344_v19, %v2612_v16  ;;  %v398_v22 = vmul.f32 %v397_v20, %v2612_v16  ;;  %1495 = vperm.xlu2 %2095, %v2011_v17  }
 0x196   :  { %v346_v28 = vadd.f32 1e-08, %v345_v21  ;;  %v399_v29 = vadd.f32 1e-08, %v398_v22  ;;  %v1947_v21 = vld [vmem:[%s2889_s1 + $0x50] sm:$0xff]  ;;  %v2014_v22 = vld [vmem:[%s2889_s1 + $0xf8] sm:$0xff] }
 0x197   :  { %v185_v30 = vpop.xlane.xlu1 %184 }
 0x198   :  { %2122 = vrsqrt.f32 %v346_v28  ;;  %v186_v31 = vmul.f32 %v185_v30, %v2612_v16  ;;  %1333 = vperm.xlu0 %2096, %v1983_v27   ;;  %vm353_vm13 = vweird.f32 %v346_v28  ;;  %vm406_vm15 = vweird.f32 %v399_v29 }
 0x199   :  { %2124 = vrsqrt.f32 %v399_v29 }
 0x19a   :  { %v2627_v33 = vadd.f32 1e-08, %v186_v31 }
 0x19b   :  { %v123_v34 = vpop.xlane.xlu0 %122 }
 0x19c   :  { %2126 = vrsqrt.f32 %v2627_v33  ;;  %v131_v37 = vmul.f32 %v2612_v16, %v123_v34  ;;  %1338 = vperm.xlu2 %2095, %v1984_v32   ;;  %vm194_vm3 = vweird.f32 %v2627_v33 }
 0x19e   :  { %v2123_v39 = vpop.eup %2122  ;;  %v2634_v40 = vadd.f32 1e-08, %v131_v37 }
 0x19f   :  { %v2125_v42 = vpop.eup %2124  ;;  %v348_v43 = vmul.f32 %v2123_v39, %v346_v28  ;;  %vm354_vm11 = vweird.f32 %v2123_v39 }
 0x1a0   :  { %v401_v44 = vmul.f32 %v2125_v42, %v399_v29  ;;  %2128 = vrsqrt.f32 %v2634_v40  ;;  %1581 = vperm.xlu0 %2096, %v2026_v38   ;;  %vm407_vm12 = vweird.f32 %v2125_v42  ;;  %vm355_vm14 = vmor %vm353_vm13, %vm354_vm11  ;;  %vm139_vm6 = vweird.f32 %v2634_v40 }
 0x1a1   :  { %v349_v45 = vmul.f32 %v2123_v39, %v348_v43  ;;  %vm408_vm1 = vmor %vm406_vm15, %vm407_vm12 }
 0x1a2   :  { %v2127_v47 = vpop.eup %2126  ;;  %v402_v48 = vmul.f32 %v2125_v42, %v401_v44 }
 0x1a3   :  { %v350_v49 = vmul.f32 0.5, %v349_v45  ;;  %v189_v50 = vmul.f32 %v2127_v47, %v2627_v33  ;;  %v609_v51 = vpop.xlane.xlu1 %608  ;;  %v556_v52 = vpop.xlane.xlu0 %555  ;;  %vm195_vm0 = vweird.f32 %v2127_v47 }
 0x1a4   :  { %v403_v53 = vmul.f32 0.5, %v402_v48  ;;  %v610_v54 = vmul.f32 %v609_v51, %v2612_v16  ;;  %v557_v59 = vmul.f32 %v556_v52, %v2612_v16  ;;  %1424 = vperm.xlu2 %2095, %v1999_v46   ;;  %vm196_vm4 = vmor %vm194_vm3, %vm195_vm0 }
 0x1a5   :  { %v351_v61 = vsub.f32 1.5, %v350_v49  ;;  %v190_v62 = vmul.f32 %v2127_v47, %v189_v50  ;;  %v1962_v49 = vld [vmem:[%s2889_s1 + $0x78] sm:$0xff] }
 0x1a6   :  { %v2646_v1 = vpop.eup %2128  ;;  %v404_v2 = vsub.f32 1.5, %v403_v53  ;;  %v2648_v3 = vadd.f32 1e-08, %v610_v54  ;;  %v2650_v10 = vadd.f32 1e-08, %v557_v59 }
 0x1a7   :  { %v352_v11 = vmul.f32 %v2123_v39, %v351_v61  ;;  %v191_v13 = vmul.f32 0.5, %v190_v62  ;;  %v134_v14 = vmul.f32 %v2646_v1, %v2634_v40  ;;  %v291_v0 = vpop.xlane.xlu2 %290  ;;  %vm140_vm5 = vweird.f32 %v2646_v1  ;;  %v2027_v40 = vld [vmem:[%s2889_s1 + $0x110] sm:$0xff] }
 0x1a8   :  { %v405_v17 = vmul.f32 %v2125_v42, %v404_v2  ;;  %2130 = vrsqrt.f32 %v2648_v3  ;;  %1505 = vperm.xlu0 %2096, %v2013_v63   ;;  %v292_v29 = vmul.f32 %v291_v0, %v2612_v16  ;;  %vm141_vm8 = vmor %vm139_vm6, %vm140_vm5  ;;  %vm618_vm12 = vweird.f32 %v2648_v3 }
 0x1a9   :  { %v356_v18 = vsel %vm355_vm14, %v2123_v39, %v352_v11  ;;  %v192_v19 = vsub.f32 1.5, %v191_v13  ;;  %v135_v20 = vmul.f32 %v2646_v1, %v134_v14  ;;  %2132 = vrsqrt.f32 %v2650_v10 }
 0x1aa   :  { %v357_v27 = vmul.f32 %v356_v18, %v2452_v56  ;;  %v409_v28 = vsel %vm408_vm1, %v2125_v42, %v405_v17  ;;  %v2670_v37 = vadd.f32 1e-08, %v292_v29  ;;  %vm565_vm14 = vweird.f32 %v2650_v10 }
 0x1ab   :  { %v410_v30 = vmul.f32 %v409_v28, %v2450_v55  ;;  %v193_v31 = vmul.f32 %v2127_v47, %v192_v19  ;;  %v136_v32 = vmul.f32 0.5, %v135_v20  ;;  %v238_v34 = vpop.xlane.xlu1 %237  ;;  %v1986_v55 = vld [vmem:[%s2889_s1 + $0xb8] sm:$0xff] }
 0x1ac   :  { %358 = vst.msk [vmem:[#allocation2 + $0xc] sm:$0x1] %vm144_vm9, %v357_v27  ;;  %v239_v38 = vmul.f32 %v238_v34, %v2612_v16  ;;  %1129 = vperm.xlu1 %2097, %v1947_v21   ;;  %1510 = vperm.xlu2 %2095, %v2014_v22   ;;  %2134 = vrsqrt.f32 %v2670_v37  ;;  %vm300_vm1 = vweird.f32 %v2670_v37 }
 0x1ad   :  { %359 = vst.msk [vmem:[#allocation2 + $0x1b] sm:$0x2] %vm146_vm2, %v357_v27  ;;  %v197_v56 = vsel %vm196_vm4, %v2127_v47, %v193_v31  ;;  %v137_v39 = vsub.f32 1.5, %v136_v32  ;;  %v1997_v27 = vld [vmem:[%s2889_s1 + $0xc0] sm:$0xff] }
 0x1ae   :  { %v2131_v33 = vpop.eup %2130  ;;  %411 = vst.msk [vmem:[#allocation2 + $0xd] sm:$0x1] %vm144_vm9, %v410_v30  ;;  %v198_v42 = vmul.f32 %v197_v56, %v2460_v4  ;;  %v2681_v43 = vadd.f32 1e-08, %v239_v38 }
 0x1af   :  { %v2133_v44 = vpop.eup %2132  ;;  %412 = vst.msk [vmem:[#allocation2 + $0x1c] sm:$0x2] %vm146_vm2, %v410_v30  ;;  %v138_v45 = vmul.f32 %v2646_v1, %v137_v39  ;;  %v613_v46 = vmul.f32 %v2131_v33, %v2648_v3  ;;  %vm619_vm10 = vweird.f32 %v2131_v33 }
 0x1b0   :  { %199 = vst.msk [vmem:[#allocation2 + $0x9] sm:$0x1] %vm144_vm9, %v198_v42  ;;  %v560_v47 = vmul.f32 %v2133_v44, %v2650_v10  ;;  %2136 = vrsqrt.f32 %v2681_v43  ;;  %1348 = vperm.xlu0 %2096, %v1986_v55   ;;  %vm566_vm11 = vweird.f32 %v2133_v44  ;;  %vm620_vm13 = vmor %vm618_vm12, %vm619_vm10  ;;  %vm247_vm5 = vweird.f32 %v2681_v43 }
 0x1b1   :  { %200 = vst.msk [vmem:[#allocation2 + $0x18] sm:$0x2] %vm146_vm2, %v198_v42  ;;  %v142_v4 = vsel %vm141_vm8, %v2646_v1, %v138_v45  ;;  %v614_v48 = vmul.f32 %v2131_v33, %v613_v46  ;;  %vm567_vm15 = vmor %vm565_vm14, %vm566_vm11 }
 0x1b2   :  { %v143_v50 = vmul.f32 %v142_v4, %v2462_v5  ;;  %v561_v51 = vmul.f32 %v2133_v44, %v560_v47  ;;  %v2135_v59 = vpop.eup %2134 }
 0x1b3   :  { %v615_v52 = vmul.f32 0.5, %v614_v48  ;;  %v821_v53 = vpop.xlane.xlu2 %820  ;;  %v768_v54 = vpop.xlane.xlu1 %767  ;;  %v295_v5 = vmul.f32 %v2135_v59, %v2670_v37  ;;  %vm301_vm0 = vweird.f32 %v2135_v59  ;;  %v2012_v48 = vld [vmem:[%s2889_s1 + $0xe8] sm:$0xff] }
 0x1b4   :  { %145 = vst.msk [vmem:[#allocation2 + $0x8] sm:$0x1] %vm144_vm9, %v143_v50  ;;  %v562_v61 = vmul.f32 0.5, %v561_v51  ;;  %v822_v62 = vmul.f32 %v821_v53, %v2612_v16  ;;  %v769_v63 = vmul.f32 %v768_v54, %v2612_v16  ;;  %1215 = vperm.xlu1 %2097, %v1962_v49   ;;  %1586 = vperm.xlu2 %2095, %v2027_v40   ;;  %vm302_vm4 = vmor %vm300_vm1, %vm301_vm0 }
 0x1b5   :  { %147 = vst.msk [vmem:[#allocation2 + $0x17] sm:$0x2] %vm146_vm2, %v143_v50  ;;  %v616_v1 = vsub.f32 1.5, %v615_v52  ;;  %v296_v17 = vmul.f32 %v2135_v59, %v295_v5  ;;  %v2066_v5 = vld [vmem:[#allocation3 + $0x8] sm:$0xff] }
 0x1b6   :  { %v2137_v2 = vpop.eup %2136  ;;  %v563_v11 = vsub.f32 1.5, %v562_v61  ;;  %v2704_v13 = vadd.f32 1e-08, %v822_v62  ;;  %v2706_v14 = vadd.f32 1e-08, %v769_v63  ;;  %1010 = vmatpush.bf16.msrb.mxu0 %v2066_v5 }
 0x1b7   :  { %v617_v0 = vmul.f32 %v2131_v33, %v616_v1  ;;  %v242_v18 = vmul.f32 %v2137_v2, %v2681_v43  ;;  %v297_v21 = vmul.f32 0.5, %v296_v17  ;;  %vm248_vm3 = vweird.f32 %v2137_v2  ;;  %v2025_v17 = vld [vmem:[%s2889_s1 + $0x100] sm:$0xff] }
 0x1b8   :  { %v564_v19 = vmul.f32 %v2133_v44, %v563_v11  ;;  %2138 = vrsqrt.f32 %v2704_v13  ;;  %vm249_vm6 = vmor %vm247_vm5, %vm248_vm3  ;;  %vm830_vm11 = vweird.f32 %v2704_v13 }
 0x1b9   :  { %v621_v20 = vsel %vm620_vm13, %v2131_v33, %v617_v0  ;;  %v243_v22 = vmul.f32 %v2137_v2, %v242_v18  ;;  %2140 = vrsqrt.f32 %v2706_v14  ;;  %v298_v30 = vsub.f32 1.5, %v297_v21 }
 0x1ba   :  { %v622_v3 = vmul.f32 %v621_v20, %v2482_v23  ;;  %v568_v28 = vsel %vm567_vm15, %v2133_v44, %v564_v19  ;;  %vm777_vm13 = vweird.f32 %v2706_v14 }
 0x1bb   :  { %v569_v29 = vmul.f32 %v568_v28, %v2484_v24  ;;  %v244_v10 = vmul.f32 0.5, %v243_v22  ;;  %v503_v31 = vpop.xlane.xlu2 %502  ;;  %v450_v32 = vpop.xlane.xlu1 %449  ;;  %v299_v56 = vmul.f32 %v2135_v59, %v298_v30 }
 0x1bc   :  { %623 = vst.msk [vmem:[#allocation2 + $0x11] sm:$0x1] %vm144_vm9, %v622_v3  ;;  %v504_v34 = vmul.f32 %v503_v31, %v2612_v16  ;;  %v451_v38 = vmul.f32 %v450_v32, %v2612_v16  ;;  %1414 = vperm.xlu1 %2097, %v1997_v27   ;;  %v2067_v31 = vld [vmem:[#allocation3 + $0x10] sm:$0xff] }
 0x1bd   :  { %624 = vst.msk [vmem:[#allocation2 + $0x20] sm:$0x2] %vm146_vm2, %v622_v3  ;;  %v245_v23 = vsub.f32 1.5, %v244_v10  ;;  %v303_v42 = vsel %vm302_vm4, %v2135_v59, %v299_v56  ;;  %v2068_v3 = vld [vmem:[#allocation3 + $0x18] sm:$0xff] }
 0x1be   :  { %v2139_v24 = vpop.eup %2138  ;;  %570 = vst.msk [vmem:[#allocation2 + $0x10] sm:$0x1] %vm144_vm9, %v569_v29  ;;  %v2725_v39 = vadd.f32 1e-08, %v504_v34  ;;  %v2727_v55 = vadd.f32 1e-08, %v451_v38  ;;  %v304_v45 = vmul.f32 %v303_v42, %v2492_v35  ;;  %1091 = vmatpush.bf16.msrb.mxu1 %v2068_v3 }
 0x1bf   :  { %v2141_v33 = vpop.eup %2140  ;;  %571 = vst.msk [vmem:[#allocation2 + $0x1f] sm:$0x2] %vm146_vm2, %v569_v29  ;;  %v246_v44 = vmul.f32 %v2137_v2, %v245_v23  ;;  %v825_v37 = vmul.f32 %v2139_v24, %v2704_v13  ;;  %vm831_vm8 = vweird.f32 %v2139_v24  ;;  %v2065_v29 = vld [vmem:[#allocation3] sm:$0xff]  ;;  %v2000_v38 = vld [vmem:[%s2889_s1 + $0xd8] sm:$0xff] }
 0x1c0   :  { %v772_v46 = vmul.f32 %v2141_v33, %v2706_v14  ;;  %2142 = vrsqrt.f32 %v2725_v39  ;;  %305 = vst.msk [vmem:[#allocation2 + $0xb] sm:$0x1] %vm144_vm9, %v304_v45  ;;  %vm778_vm10 = vweird.f32 %v2141_v33  ;;  %vm832_vm12 = vmor %vm830_vm11, %vm831_vm8  ;;  %1011 = vmatpush.bf16.msrb.mxu0 %v2065_v29  ;;  %vm512_vm1 = vweird.f32 %v2725_v39 }
 0x1c1   :  { %v250_v47 = vsel %vm249_vm6, %v2137_v2, %v246_v44  ;;  %v826_v4 = vmul.f32 %v2139_v24, %v825_v37  ;;  %2144 = vrsqrt.f32 %v2727_v55  ;;  %306 = vst.msk [vmem:[#allocation2 + $0x1a] sm:$0x2] %vm146_vm2, %v304_v45  ;;  %v2070_v2 = vld [vmem:[#allocation3 + $0x28] sm:$0xff]  ;;  %vm779_vm14 = vmor %vm777_vm13, %vm778_vm10  ;;  %vm459_vm4 = vweird.f32 %v2727_v55 }
 0x1c2   :  { %v251_v43 = vmul.f32 %v250_v47, %v2494_v36  ;;  %v773_v49 = vmul.f32 %v2141_v33, %v772_v46  ;;  %1172 = vmatpush.bf16.msrb.mxu2 %v2070_v2  ;;  %1092 = vmatpush.bf16.msrb.mxu1 %v2067_v31 }
 0x1c3   :  { %v827_v35 = vmul.f32 0.5, %v826_v4  ;;  %v2072_v4 = vld [vmem:[#allocation3 + $0x38] sm:$0xff] }
 0x1c4   :  { %252 = vst.msk [vmem:[#allocation2 + $0xa] sm:$0x1] %vm144_vm9, %v251_v43  ;;  %v774_v40 = vmul.f32 0.5, %v773_v49  ;;  %1500 = vperm.xlu1 %2097, %v2012_v48   ;;  %1253 = vmatpush.bf16.msrb.mxu3 %v2072_v4 }
 0x1c5   :  { %253 = vst.msk [vmem:[#allocation2 + $0x19] sm:$0x2] %vm146_vm2, %v251_v43  ;;  %v828_v50 = vsub.f32 1.5, %v827_v35  ;;  %v1985_v43 = vld [vmem:[%s2889_s1 + $0xb0] sm:$0xff] }
 0x1c6   :  { %v2143_v51 = vpop.eup %2142  ;;  %v775_v52 = vsub.f32 1.5, %v774_v40  ;;  %v2071_v40 = vld [vmem:[#allocation3 + $0x30] sm:$0xff] }
 0x1c7   :  { %v2145_v53 = vpop.eup %2144  ;;  %v829_v54 = vmul.f32 %v2139_v24, %v828_v50  ;;  %v507_v36 = vmul.f32 %v2143_v51, %v2725_v39  ;;  %v662_v59 = vpop.xlane.xlu2 %661  ;;  %vm513_vm15 = vweird.f32 %v2143_v51 }
 0x1c8   :  { %v715_v61 = vpop.xlane.xlu0 %714  ;;  %v776_v62 = vmul.f32 %v2141_v33, %v775_v52  ;;  %v454_v63 = vmul.f32 %v2145_v53, %v2727_v55  ;;  %v663_v1 = vmul.f32 %v662_v59, %v2612_v16  ;;  %vm460_vm0 = vweird.f32 %v2145_v53  ;;  %vm514_vm3 = vmor %vm512_vm1, %vm513_vm15  ;;  %1254 = vmatpush.bf16.msrb.mxu3 %v2071_v40 }
 0x1c9   :  { %v833_v11 = vsel %vm832_vm12, %v2139_v24, %v829_v54  ;;  %v508_v0 = vmul.f32 %v2143_v51, %v507_v36  ;;  %v716_v13 = vmul.f32 %v715_v61, %v2612_v16  ;;  %vm461_vm5 = vmor %vm459_vm4, %vm460_vm0  ;;  %v2028_v61 = vld [vmem:[%s2889_s1 + $0x118] sm:$0xff] }
 0x1ca   :  { %v834_v18 = vmul.f32 %v833_v11, %v2514_v57  ;;  %v780_v19 = vsel %vm779_vm14, %v2141_v33, %v776_v62  ;;  %v455_v14 = vmul.f32 %v2145_v53, %v454_v63  ;;  %v2755_v20 = vadd.f32 1e-08, %v663_v1  ;;  %v2069_v57 = vld [vmem:[#allocation3 + $0x20] sm:$0xff] }
 0x1cb   :  { %v781_v21 = vmul.f32 %v780_v19, %v2516_v58  ;;  %v509_v22 = vmul.f32 0.5, %v508_v0  ;;  %v2758_v27 = vadd.f32 1e-08, %v716_v13  ;;  %1173 = vmatpush.bf16.msrb.mxu2 %v2069_v57  ;;  %v948_v1 = vld [vmem:[#allocation2 + $0x3] sm:$0xff] }
 0x1cc   :  { %835 = vst.msk [vmem:[#allocation2 + $0x15] sm:$0x1] %vm144_vm9, %v834_v18  ;;  %v456_v28 = vmul.f32 0.5, %v455_v14  ;;  %2146 = vrsqrt.f32 %v2755_v20  ;;  %1576 = vperm.xlu1 %2097, %v2025_v17   ;;  %vm671_vm10 = vweird.f32 %v2755_v20  ;;  %v976_v2 = vmul.f32 %v2588_v60, %v948_v1  ;;  %v1108_v0 = vld [vmem:[#allocation2 + $0x5] sm:$0xff] }
 0x1cd   :  { %836 = vst.msk [vmem:[#allocation2 + $0x24] sm:$0x2] %vm146_vm2, %v834_v18  ;;  %v510_v30 = vsub.f32 1.5, %v509_v22  ;;  %2148 = vrsqrt.f32 %v2758_v27  ;;  %vm724_vm12 = vweird.f32 %v2758_v27 }
 0x1ce   :  { %782 = vst.msk [vmem:[#allocation2 + $0x14] sm:$0x1] %vm144_vm9, %v781_v21  ;;  %v457_v58 = vsub.f32 1.5, %v456_v28 }
 0x1cf   :  { %783 = vst.msk [vmem:[#allocation2 + $0x23] sm:$0x2] %vm146_vm2, %v781_v21  ;;  %v511_v10 = vmul.f32 %v2143_v51, %v510_v30  ;;  %v1120_v45 = vpop.permute.xlu2 %1119 }
 0x1d0   :  { %v458_v32 = vmul.f32 %v2145_v53, %v457_v58  ;;  %v1137_v14 = vmul.f32 %v1120_v45, %v1108_v0 }
 0x1d1   :  { %v515_v34 = vsel %vm514_vm3, %v2143_v51, %v511_v10 }
 0x1d2   :  { %v2147_v56 = vpop.eup %2146  ;;  %v516_v23 = vmul.f32 %v515_v34, %v2524_v8  ;;  %v462_v24 = vsel %vm461_vm5, %v2145_v53, %v458_v32 }
 0x1d3   :  { %v2149_v33 = vpop.eup %2148  ;;  %v463_v42 = vmul.f32 %v462_v24, %v2526_v9  ;;  %v666_v39 = vmul.f32 %v2147_v56, %v2755_v20  ;;  %vm672_vm6 = vweird.f32 %v2147_v56  ;;  %v1125_v13 = vpop.permute.xlu1 %1124 }
 0x1d4   :  { %517 = vst.msk [vmem:[#allocation2 + $0xf] sm:$0x1] %vm144_vm9, %v516_v23  ;;  %v719_v55 = vmul.f32 %v2149_v33, %v2758_v27  ;;  %1429 = vperm.xlu1 %2097, %v2000_v38   ;;  %vm725_vm8 = vweird.f32 %v2149_v33  ;;  %vm673_vm11 = vmor %vm671_vm10, %vm672_vm6  ;;  %v1027_v27 = vld [vmem:[#allocation2 + $0x4] sm:$0xff] }
 0x1d5   :  { %518 = vst.msk [vmem:[#allocation2 + $0x1e] sm:$0x2] %vm146_vm2, %v516_v23  ;;  %v667_v44 = vmul.f32 %v2147_v56, %v666_v39  ;;  %vm726_vm13 = vmor %vm724_vm12, %vm725_vm8 }
 0x1d6   :  { %464 = vst.msk [vmem:[#allocation2 + $0xe] sm:$0x1] %vm144_vm9, %v463_v42  ;;  %v720_v37 = vmul.f32 %v2149_v33, %v719_v55  ;;  %v2078_v55 = vld [vmem:[#allocation3 + $0x68] sm:$0xff] }
 0x1d7   :  { %465 = vst.msk [vmem:[#allocation2 + $0x1d] sm:$0x2] %vm146_vm2, %v463_v42  ;;  %v668_v8 = vmul.f32 0.5, %v667_v44  ;;  %v874_v46 = vpop.xlane.xlu0 %873  ;;  %v1201_v59 = vpop.permute.xlu2 %1200  ;;  %v2073_v42 = vld [vmem:[#allocation3 + $0x40] sm:$0xff]  ;;  %v2080_v44 = vld [vmem:[#allocation3 + $0x78] sm:$0xff]  ;;  %1467 = vmatpush.bf16.msra.mxu2 %v2078_v55 }
 0x1d8   :  { %v721_v47 = vmul.f32 0.5, %v720_v37  ;;  %v875_v9 = vmul.f32 %v874_v46, %v2612_v16  ;;  %v2076_v37 = vld [vmem:[#allocation3 + $0x58] sm:$0xff]  ;;  %1548 = vmatpush.bf16.msra.mxu3 %v2080_v44 }
 0x1d9   :  { %v669_v48 = vsub.f32 1.5, %v668_v8  ;;  %1386 = vmatpush.bf16.msra.mxu1 %v2076_v37 }
 0x1da   :  { %v722_v49 = vsub.f32 1.5, %v721_v47  ;;  %v876_v35 = vadd.f32 1e-08, %v875_v9 }
 0x1db   :  { %v670_v50 = vmul.f32 %v2147_v56, %v669_v48  ;;  %v1206_v31 = vpop.permute.xlu1 %1205  ;;  %v2075_v48 = vld [vmem:[#allocation3 + $0x50] sm:$0xff] }
 0x1dc   :  { %v723_v51 = vmul.f32 %v2149_v33, %v722_v49  ;;  %2150 = vrsqrt.f32 %v876_v35  ;;  %1343 = vperm.xlu1 %2097, %v1985_v43   ;;  %vm883_vm15 = vweird.f32 %v876_v35  ;;  %v2077_v43 = vld [vmem:[#allocation3 + $0x60] sm:$0xff]  ;;  %v2079_v49 = vld [vmem:[#allocation3 + $0x70] sm:$0xff] }
 0x1dd   :  { %v674_v52 = vsel %vm673_vm11, %v2147_v56, %v670_v50  ;;  %v1189_v10 = vld [vmem:[#allocation2 + $0x7] sm:$0xff]  ;;  %1387 = vmatpush.bf16.msra.mxu1 %v2075_v48  ;;  %1468 = vmatpush.bf16.msra.mxu2 %v2077_v43 }
 0x1de   :  { %v675_v53 = vmul.f32 %v674_v52, %v2540_v25  ;;  %v727_v54 = vsel %vm726_vm13, %v2149_v33, %v723_v51  ;;  %v1218_v34 = vmul.f32 %v1201_v59, %v1189_v10  ;;  %v2074_v33 = vld [vmem:[#allocation3 + $0x48] sm:$0xff]  ;;  %1549 = vmatpush.bf16.msra.mxu3 %v2079_v49 }
 0x1df   :  { %v728_v36 = vmul.f32 %v727_v54, %v2542_v26  ;;  %v1044_v21 = vpop.permute.xlu2 %1043  ;;  %1305 = vmatpush.bf16.msra.mxu0 %v2074_v33 }
 0x1e0   :  { %676 = vst.msk [vmem:[#allocation2 + $0x12] sm:$0x1] %vm144_vm9, %v675_v53 }
 0x1e1   :  { %677 = vst.msk [vmem:[#allocation2 + $0x21] sm:$0x2] %vm146_vm2, %v675_v53  ;;  %v2082_v53 = vld [vmem:[#allocation3 + $0x88] sm:$0xff] }
 0x1e2   :  { %v2151_v62 = vpop.eup %2150  ;;  %729 = vst.msk [vmem:[#allocation2 + $0x13] sm:$0x1] %vm144_vm9, %v728_v36 }
 0x1e3   :  { %730 = vst.msk [vmem:[#allocation2 + $0x22] sm:$0x2] %vm146_vm2, %v728_v36  ;;  %v878_v63 = vmul.f32 %v2151_v62, %v876_v35  ;;  %vm884_vm14 = vweird.f32 %v2151_v62  ;;  %1306 = vmatpush.bf16.msra.mxu0 %v2073_v42  ;;  %v1270_v42 = vld [vmem:[#allocation2 + $0x8] sm:$0xff] }
 0x1e4   :  { %1591 = vperm.xlu1 %2097, %v2028_v61   ;;  %vm885_vm0 = vmor %vm883_vm15, %vm884_vm14 }
 0x1e5   :  { %v879_v25 = vmul.f32 %v2151_v62, %v878_v63 }
 0x1e7   :  { %v880_v5 = vmul.f32 0.5, %v879_v25  ;;  %v2794_v26 = vld [vmem:[#allocation2 + $0xb] sm:$0xff]  ;;  %v1211_v46 = vpop.permute.xlu2 %1210 }
 0x1e8   :  { %v977_v11 = vmul.f32 %v2598_v7, %v2794_v26  ;;  %v1405_v36 = vld [vmem:[#allocation2 + $0x1b] sm:$0xff] }
 0x1e9   :  { %v2799_v17 = vld [vmem:[#allocation2 + $0xd] sm:$0xff]  ;;  %v881_v18 = vsub.f32 1.5, %v880_v5 }
 0x1ea   :  { %v2801_v19 = vld [vmem:[#allocation2 + $0xc] sm:$0xff]  ;;  %v1138_v20 = vmul.f32 %v1125_v13, %v2799_v17  ;;  %v1039_v22 = vpop.permute.xlu0 %1038  ;;  %v980_v3 = vpack.c.bf16 %v977_v11, %v976_v2  ;;  %v2816_v59 = vld [vmem:[#allocation2 + $0x1d] sm:$0xff] }
 0x1eb   :  { %v882_v28 = vmul.f32 %v2151_v62, %v881_v18  ;;  %v1057_v60 = vmul.f32 %v1044_v21, %v2801_v19  ;;  %v1056_v7 = vmul.f32 %v1039_v22, %v1027_v27  ;;  %v1030_v13 = vld [vmem:[#allocation2 + $0x1c] sm:$0xff] }
 0x1ec   :  { %v1141_v29 = vpack.c.bf16 %v1138_v20, %v1137_v14  ;;  %1929 = vmatmul.msk.bf16.vlgmr.msrb.gmra.mxu0 %vm47_vm7, %v980_v3  ;;  %v979_v20 = vmul.f32 %v1405_v36, %v2596_v6 }
 0x1ed   :  { %v886_v57 = vsel %vm885_vm0, %v2151_v62, %v882_v28  ;;  %v1060_v30 = vpack.c.bf16 %v1057_v60, %v1056_v7  ;;  %1629 = vmatpush.bf16.msrb.mxu0 %v2082_v53 }
 0x1ee   :  { %v887_v58 = vmul.f32 %v886_v57, %v2556_v41  ;;  %1957 = vmatmul.msk.bf16.vlgmr.msrb.gmra.mxu2 %vm47_vm7, %v1141_v29  ;;  %v2081_v29 = vld [vmem:[#allocation3 + $0x80] sm:$0xff] }
 0x1ef   :  { %1943 = vmatmul.msk.bf16.vlgmr.msrb.gmra.mxu1 %vm47_vm7, %v1060_v30  ;;  %v1054_v51 = vpop.permute.xlu2 %1053 }
 0x1f0   :  { %888 = vst.msk [vmem:[#allocation2 + $0x16] sm:$0x1] %vm144_vm9, %v887_v58  ;;  %v1059_v22 = vmul.f32 %v1054_v51, %v1030_v13 }
 0x1f1   :  { %889 = vst.msk [vmem:[#allocation2 + $0x25] sm:$0x2] %vm146_vm2, %v887_v58  ;;  %1630 = vmatpush.bf16.msrb.mxu0 %v2081_v29 }
 0x1f2   :  { %v1135_v45 = vpop.permute.xlu0 %1134 }
 0x1f3   :  { %v1140_v1 = vmul.f32 %v1135_v45, %v2816_v59 }
 0x1f7   :  { %v1190_v32 = vld [vmem:[#allocation2 + $0xf] sm:$0xff]  ;;  %v1496_v5 = vpop.permute.xlu2 %1495 }
 0x1f8   :  { %v1219_v38 = vmul.f32 %v1206_v31, %v1190_v32  ;;  %v1192_v2 = vld [vmem:[#allocation2 + $0x1f] sm:$0xff]  ;;  %v1513_v31 = vmul.f32 %v1496_v5, %v2801_v19 }
 0x1fa   :  { %v1222_v56 = vpack.c.bf16 %v1219_v38, %v1218_v34  ;;  %v1049_v40 = vpop.permute.xlu0 %1048 }
 0x1fc   :  { %1971 = vmatmul.msk.bf16.vlgmr.msrb.gmra.mxu3 %vm47_vm7, %v1222_v56 }
 0x1ff   :  { %v1339_v6 = vpop.permute.xlu2 %1338 }
 0x202   :  { %v1420_v61 = vpop.permute.xlu0 %1419 }
 0x206   :  { %v927_v23 = vpop.xlane.xlu1 %926 }
 0x207   :  { %v928_v24 = vmul.f32 %v927_v23, %v2612_v16  ;;  %v1322_v23 = vld [vmem:[#allocation2 + $0x9] sm:$0xff]  ;;  %v1425_v44 = vpop.permute.xlu2 %1424 }
 0x209   :  { %v929_v41 = vadd.f32 1e-08, %v928_v24 }
 0x20b   :  { %2152 = vrsqrt.f32 %v929_v41  ;;  %vm936_vm3 = vweird.f32 %v929_v41 }
 0x211   :  { %v2153_v39 = vpop.eup %2152 }
 0x212   :  { %v931_v8 = vmul.f32 %v2153_v39, %v929_v41  ;;  %vm937_vm1 = vweird.f32 %v2153_v39 }
 0x213   :  { %vm938_vm4 = vmor %vm936_vm3, %vm937_vm1 }
 0x214   :  { %v932_v47 = vmul.f32 %v2153_v39, %v931_v8  ;;  %v1511_v8 = vpop.permute.xlu2 %1510 }
 0x216   :  { %v933_v9 = vmul.f32 0.5, %v932_v47 }
 0x218   :  { %v934_v4 = vsub.f32 1.5, %v933_v9 }
 0x21a   :  { %v935_v35 = vmul.f32 %v2153_v39, %v934_v4  ;;  %v1434_v4 = vmul.f32 %v1425_v44, %v1405_v36 }
 0x21c   :  { %v939_v50 = vsel %vm938_vm4, %v2153_v39, %v935_v35 }
 0x21d   :  { %v940_v52 = vmul.f32 %v939_v50, %v2603_v12 }
 0x21e   :  { %v1130_v54 = vpop.permute.xlu1 %1129 }
 0x21f   :  { %941 = vst.msk [vmem:[#allocation2 + $0x17] sm:$0x1] %vm144_vm9, %v940_v52 }
 0x220   :  { %942 = vst.msk [vmem:[#allocation2 + $0x26] sm:$0x2] %vm146_vm2, %v940_v52 }
 0x226   :  { %v2818_v62 = vld [vmem:[#allocation2 + $0x15] sm:$0xff]  ;;  %v1216_v63 = vpop.permute.xlu1 %1215 }
 0x227   :  { %v1191_v25 = vld [vmem:[#allocation2 + $0x17] sm:$0xff]  ;;  %v1139_v12 = vmul.f32 %v2818_v62, %v1130_v54  ;;  %v1221_v18 = vmul.f32 %v1216_v63, %v1192_v2  ;;  %v1487_v19 = vld [vmem:[#allocation2 + $0x24] sm:$0xff] }
 0x228   :  { %v1220_v11 = vmul.f32 %v1211_v46, %v1191_v25  ;;  %v950_v0 = vld [vmem:[#allocation2 + $0x13] sm:$0xff]  ;;  %v1516_v46 = vmul.f32 %v1511_v8, %v1487_v19  ;;  %v1406_v9 = vld [vmem:[#allocation2 + $0x23] sm:$0xff] }
 0x229   :  { %v978_v14 = vmul.f32 %v2610_v15, %v950_v0  ;;  %v1029_v21 = vld [vmem:[#allocation2 + $0x14] sm:$0xff]  ;;  %v1142_v27 = vpack.c.bf16 %v1140_v1, %v1139_v12  ;;  %v1334_v15 = vpop.permute.xlu0 %1333  ;;  %v1433_v34 = vmul.f32 %v1420_v61, %v950_v0  ;;  %v1273_v43 = vld [vmem:[#allocation2 + $0x20] sm:$0xff] }
 0x22a   :  { %v1058_v3 = vmul.f32 %v1049_v40, %v1029_v21  ;;  %v1223_v28 = vpack.c.bf16 %v1221_v18, %v1220_v11  ;;  %v1323_v30 = vld [vmem:[#allocation2 + $0x11] sm:$0xff]  ;;  %v1351_v24 = vmul.f32 %v1334_v15, %v1322_v23  ;;  %v1325_v52 = vld [vmem:[#allocation2 + $0x21] sm:$0xff]  ;;  %v1324_v61 = vld [vmem:[#allocation2 + $0x19] sm:$0xff]  ;;  %v1587_v11 = vpop.permute.xlu2 %1586 }
 0x22b   :  { %v981_v60 = vpack.c.bf16 %v979_v20, %v978_v14  ;;  %1958 = vmatmul.msk.bf16.gmra.mxu2 %vm47_vm7, %v1142_v27  ;;  %v1352_v32 = vmul.f32 %v1339_v6, %v1323_v30  ;;  %v1271_v56 = vld [vmem:[#allocation2 + $0x10] sm:$0xff]  ;;  %v1272_v40 = vld [vmem:[#allocation2 + $0x18] sm:$0xff]  ;;  %v1568_v0 = vld [vmem:[#allocation2 + $0x25] sm:$0xff]  ;;  %v1596_v18 = vmul.f32 %v1587_v11, %v2816_v59 }
 0x22c   :  { %v1061_v7 = vpack.c.bf16 %v1059_v22, %v1058_v3  ;;  %1972 = vmatmul.msk.bf16.gmra.mxu3 %vm47_vm7, %v1223_v28  ;;  %v1274_v55 = vpack.c.bf16 %v1271_v56, %v1270_v42  ;;  %v1275_v51 = vpack.c.bf16 %v1273_v43, %v1272_v40  ;;  %v2114_v59 = vld [vmem:[%s2893_s5] ss:$0 sm:$0xff] }
 0x22d   :  { %1930 = vmatmul.msk.bf16.gmra.mxu0 %vm47_vm7, %v981_v60  ;;  %v1355_v37 = vpack.c.bf16 %v1352_v32, %v1351_v24 }
 0x22e   :  { %1944 = vmatmul.msk.bf16.gmra.mxu1 %vm47_vm7, %v1061_v7  ;;  %v1415_v57 = vpop.permute.xlu1 %1414 }
 0x22f   :  { %v1432_v58 = vmul.f32 %v1415_v57, %v2794_v26 }
 0x231   :  { %v1436_v41 = vpack.c.bf16 %v1433_v34, %v1432_v58  ;;  %v1582_v39 = vpop.permute.xlu0 %1581 }
 0x232   :  { %v1595_v5 = vmul.f32 %v1582_v39, %v2818_v62 }
 0x236   :  { %v1501_v10 = vpop.permute.xlu1 %1500 }
 0x237   :  { %v1514_v38 = vmul.f32 %v1501_v10, %v1029_v21 }
 0x239   :  { %v1517_v33 = vpack.c.bf16 %v1514_v38, %v1513_v31  ;;  %v1506_v45 = vpop.permute.xlu0 %1505 }
 0x23a   :  { %v1515_v49 = vmul.f32 %v1506_v45, %v1030_v13 }
 0x23b   :  { %2009 = vmatmul.msk.bf16.vlgmr.msra.gmra.mxu2 %vm47_vm7, %v1436_v41 }
 0x23c   :  { %2023 = vmatmul.msk.bf16.vlgmr.msra.gmra.mxu3 %vm47_vm7, %v1517_v33  ;;  %v1518_v50 = vpack.c.bf16 %v1516_v46, %v1515_v49 }
 0x23d   :  { %1981 = vmatmul.msk.bf16.vlgmr.msra.gmra.mxu0 %vm47_vm7, %v1274_v55 }
 0x23e   :  { %1995 = vmatmul.msk.bf16.vlgmr.msra.gmra.mxu1 %vm47_vm7, %v1355_v37  ;;  %v1577_v26 = vpop.permute.xlu1 %1576 }
 0x23f   :  { %v1594_v1 = vmul.f32 %v1577_v26, %v2799_v17 }
 0x241   :  { %v1349_v53 = vpop.permute.xlu0 %1348  ;;  %v1598_v12 = vpack.c.bf16 %v1595_v5, %v1594_v1 }
 0x242   :  { %v1354_v63 = vmul.f32 %v1349_v53, %v1325_v52 }
 0x246   :  { %v1430_v47 = vpop.permute.xlu1 %1429 }
 0x247   :  { %v1435_v48 = vmul.f32 %v1430_v47, %v1406_v9 }
 0x249   :  { %v1437_v35 = vpack.c.bf16 %v1435_v48, %v1434_v4 }
 0x24b   :  { %2010 = vmatmul.msk.bf16.gmra.mxu2 %vm47_vm7, %v1437_v35 }
 0x24c   :  { %2024 = vmatmul.msk.bf16.gmra.mxu3 %vm47_vm7, %v1518_v50 }
 0x24d   :  { %1982 = vmatmul.msk.bf16.gmra.mxu0 %vm47_vm7, %v1275_v51 }
 0x24e   :  { %v1344_v54 = vpop.permute.xlu1 %1343 }
 0x24f   :  { %v1353_v25 = vmul.f32 %v1344_v54, %v1324_v61 }
 0x251   :  { %v1356_v36 = vpack.c.bf16 %v1354_v63, %v1353_v25 }
 0x253   :  { %1996 = vmatmul.msk.bf16.gmra.mxu1 %vm47_vm7, %v1356_v36 }
 0x256   :  { %v1592_v2 = vpop.permute.xlu1 %1591 }
 0x257   :  { %v1597_v13 = vmul.f32 %v1592_v2, %v1568_v0 }
 0x259   :  { %v1599_v14 = vpack.c.bf16 %v1597_v13, %v1596_v18 }
 0x25d   :  { %2037 = vmatmul.msk.bf16.vlgmr.msrb.gmra.mxu0 %vm47_vm7, %v1598_v12 }
 0x269   :  { %v1013_v20 = vpop.f32.mrf.mxu0 }
 0x26a   :  { %v1023_v10 = vadd.f32 %v2114_v59, %v1013_v20 }
 0x26c   :  { %v1094_v22 = vpop.f32.mrf.mxu1 }
 0x26d   :  { %2038 = vmatmul.msk.bf16.gmra.mxu0 %vm47_vm7, %v1599_v14  ;;  %v1104_v32 = vadd.f32 %v1094_v22, %v1023_v10 }
 0x271   :  { %v1015_v21 = vpop.f32.mrf.mxu0  ;;  %v1175_v27 = vpop.f32.mrf.mxu2 }
 0x272   :  { %v1185_v23 = vadd.f32 %v1175_v27, %v1104_v32  ;;  %v1024_v24 = vadd.f32 %v2114_v59, %v1015_v21 }
 0x274   :  { %v1096_v28 = vpop.f32.mrf.mxu1 }
 0x275   :  { %v1105_v42 = vadd.f32 %v1096_v28, %v1024_v24 }
 0x279   :  { %v1177_v62 = vpop.f32.mrf.mxu2 }
 0x27a   :  { %v1186_v37 = vadd.f32 %v1177_v62, %v1105_v42 }
 0x27f   :  { %v1256_v17 = vpop.f32.mrf.mxu3 }
 0x280   :  { %v1266_v41 = vadd.f32 %v1256_v17, %v1185_v23 }
 0x287   :  { %v1258_v7 = vpop.f32.mrf.mxu3 }
 0x288   :  { %v1267_v8 = vadd.f32 %v1258_v7, %v1186_v37 }
 0x2aa   :  { %v1018_v3 = vpop.f32.mrf.mxu0 }
 0x2ab   :  { %v1099_v29 = vpop.f32.mrf.mxu1  ;;  %v1025_v26 = vadd.f32 %v2114_v59, %v1018_v3 }
 0x2ad   :  { %v1106_v47 = vadd.f32 %v1099_v29, %v1025_v26 }
 0x2ae   :  { %v1180_v57 = vpop.f32.mrf.mxu2 }
 0x2af   :  { %v1261_v6 = vpop.f32.mrf.mxu3  ;;  %v1187_v48 = vadd.f32 %v1180_v57, %v1106_v47 }
 0x2b1   :  { %v1268_v53 = vadd.f32 %v1261_v6, %v1187_v48 }
 0x2b2   :  { %v1020_v60 = vpop.f32.mrf.mxu0 }
 0x2b3   :  { %v1101_v30 = vpop.f32.mrf.mxu1  ;;  %v1026_v35 = vadd.f32 %v2114_v59, %v1020_v60 }
 0x2b5   :  { %v1107_v63 = vadd.f32 %v1101_v30, %v1026_v35 }
 0x2b6   :  { %v1182_v31 = vpop.f32.mrf.mxu2 }
 0x2b7   :  { %v1263_v34 = vpop.f32.mrf.mxu3  ;;  %v1188_v5 = vadd.f32 %v1182_v31, %v1107_v63 }
 0x2b9   :  { %v1269_v14 = vadd.f32 %v1263_v34, %v1188_v5 }
 0x2ba   :  { %v1308_v15 = vpop.f32.mrf.mxu0 }
 0x2bb   :  { %v1389_v38 = vpop.f32.mrf.mxu1  ;;  %v1318_v39 = vadd.f32 %v1308_v15, %v1266_v41 }
 0x2bd   :  { %v1399_v19 = vadd.f32 %v1389_v38, %v1318_v39 }
 0x2be   :  { %v1470_v33 = vpop.f32.mrf.mxu2 }
 0x2bf   :  { %v1551_v55 = vpop.f32.mrf.mxu3  ;;  %v1480_v46 = vadd.f32 %v1470_v33, %v1399_v19  ;;  %v2084_v33 = vld [vmem:[%s2894_s6 + $0x8] sm:$0xff] }
 0x2c0   :  { %1760 = vmatpush.bf16.msrb.mxu1 %v2084_v33 }
 0x2c1   :  { %v1561_v43 = vadd.f32 %v1551_v55, %v1480_v46  ;;  %v2083_v55 = vld [vmem:[%s2894_s6] sm:$0xff] }
 0x2c2   :  { %v1310_v58 = vpop.f32.mrf.mxu0 }
 0x2c3   :  { %v1391_v45 = vpop.f32.mrf.mxu1  ;;  %v1319_v9 = vadd.f32 %v1310_v58, %v1267_v8 }
 0x2c4   :  { %1761 = vmatpush.bf16.msrb.mxu1 %v2083_v55 }
 0x2c5   :  { %v1400_v40 = vadd.f32 %v1391_v45, %v1319_v9 }
 0x2c6   :  { %v1472_v4 = vpop.f32.mrf.mxu2 }
 0x2c7   :  { %v1553_v51 = vpop.f32.mrf.mxu3  ;;  %v1481_v54 = vadd.f32 %v1472_v4, %v1400_v40 }
 0x2c9   :  { %v1562_v12 = vadd.f32 %v1553_v51, %v1481_v54 }
 0x2ca   :  { %v1313_v56 = vpop.f32.mrf.mxu0 }
 0x2cb   :  { %v1320_v25 = vadd.f32 %v1313_v56, %v1268_v53 }
 0x2ce   :  { %v1475_v11 = vpop.f32.mrf.mxu2 }
 0x2cf   :  { %v1556_v22 = vpop.f32.mrf.mxu3 }
 0x2d0   :  { %v1394_v52 = vpop.f32.mrf.mxu1 }
 0x2d1   :  { %v1401_v2 = vadd.f32 %v1394_v52, %v1320_v25 }
 0x2d2   :  { %v1315_v44 = vpop.f32.mrf.mxu0 }
 0x2d3   :  { %v1482_v20 = vadd.f32 %v1475_v11, %v1401_v2  ;;  %v1321_v3 = vadd.f32 %v1315_v44, %v1269_v14 }
 0x2d5   :  { %v1563_v60 = vadd.f32 %v1556_v22, %v1482_v20 }
 0x2d6   :  { %v1477_v15 = vpop.f32.mrf.mxu2 }
 0x2d7   :  { %v1558_v58 = vpop.f32.mrf.mxu3 }
 0x2d8   :  { %v1396_v27 = vpop.f32.mrf.mxu1 }
 0x2d9   :  { %v1402_v62 = vadd.f32 %v1396_v27, %v1321_v3 }
 0x2da   :  { %v1632_v49 = vpop.f32.mrf.mxu0 }
 0x2db   :  { %v1642_v50 = vadd.f32 %v1632_v49, %v1561_v43  ;;  %v1483_v6 = vadd.f32 %v1477_v15, %v1402_v62 }
 0x2dd   :  { %vm1646_vm9 = vcmp.ge.f32.partialorder %v1642_v50, 0.0  ;;  %v1650_v61 = vmul.f32 0.2, %v1642_v50  ;;  %v1564_v31 = vadd.f32 %v1558_v58, %v1483_v6 }
 0x2df   :  { %v2846_v36 = vsel %vm1646_vm9, %v1642_v50, %v1650_v61 }
 0x2e0   :  { %v1658_v1 = vmul.f32 %v2846_v36, %v2846_v36 }
 0x2e2   :  { %v1634_v0 = vpop.f32.mrf.mxu0  ;;  %v1662_v13 = vsel %vm47_vm7, %v1658_v1, 0.0 }
 0x2e3   :  { %v1643_v18 = vadd.f32 %v1634_v0, %v1562_v12  ;;  %1663 = vadd.xlane.f32.xlu0 %v1662_v13 }
 0x2e5   :  { %vm1647_vm2 = vcmp.ge.f32.partialorder %v1643_v18, 0.0  ;;  %v1651_v21 = vmul.f32 0.2, %v1643_v18 }
 0x2e7   :  { %v2851_v17 = vsel %vm1647_vm2, %v1643_v18, %v1651_v21 }
 0x2e8   :  { %v1659_v28 = vmul.f32 %v2851_v17, %v2851_v17 }
 0x2ea   :  { %v1637_v7 = vpop.f32.mrf.mxu0  ;;  %v1665_v29 = vsel %vm47_vm7, %v1659_v28, 0.0 }
 0x2eb   :  { %v1644_v57 = vadd.f32 %v1637_v7, %v1563_v60  ;;  %1666 = vadd.xlane.f32.xlu2 %v1665_v29  ;;  %v2115_v29 = vld [vmem:[%s2895_s7] ss:$0 sm:$0xff]  ;;  %s2222_s7 = smov 128  }
 0x2ed   :  { %vm1648_vm5 = vcmp.ge.f32.partialorder %v1644_v57, 0.0  ;;  %v1652_v59 = vmul.f32 0.2, %v1644_v57 }
 0x2ef   :  { %v2856_v30 = vsel %vm1648_vm5, %v1644_v57, %v1652_v59 }
 0x2f0   :  { %v1660_v10 = vmul.f32 %v2856_v30, %v2856_v30 }
 0x2f2   :  { %v1639_v32 = vpop.f32.mrf.mxu0  ;;  %v1668_v34 = vsel %vm47_vm7, %v1660_v10, 0.0 }
 0x2f3   :  { %v1645_v38 = vadd.f32 %v1639_v32, %v1564_v31  ;;  %1669 = vadd.xlane.f32.xlu1 %v1668_v34 }
 0x2f5   :  { %vm1649_vm6 = vcmp.ge.f32.partialorder %v1645_v38, 0.0  ;;  %v1653_v56 = vmul.f32 0.2, %v1645_v38 }
 0x2f7   :  { %v2861_v23 = vsel %vm1649_vm6, %v1645_v38, %v1653_v56 }
 0x2f8   :  { %v1661_v24 = vmul.f32 %v2861_v23, %v2861_v23 }
 0x2fa   :  { %v1671_v41 = vsel %vm47_vm7, %v1661_v24, 0.0 }
 0x2fb   :  { %1672 = vadd.xlane.f32.xlu2 %v1671_v41 }
 0x356   :  { %v1664_v42 = vpop.xlane.xlu0 %1663 }
 0x357   :  { %v1674_v39 = vmul.f32 %v1664_v42, %v2612_v16 }
 0x359   :  { %v1678_v44 = vadd.f32 1e-08, %v1674_v39 }
 0x35b   :  { %2154 = vrsqrt.f32 %v1678_v44  ;;  %vm1688_vm10 = vweird.f32 %v1678_v44 }
 0x35e   :  { %v1667_v37 = vpop.xlane.xlu2 %1666 }
 0x35f   :  { %v1675_v26 = vmul.f32 %v1667_v37, %v2612_v16 }
 0x361   :  { %v2155_v19 = vpop.eup %2154  ;;  %v1679_v45 = vadd.f32 1e-08, %v1675_v26 }
 0x362   :  { %v1683_v8 = vmul.f32 %v2155_v19, %v1678_v44  ;;  %vm1689_vm8 = vweird.f32 %v2155_v19 }
 0x363   :  { %2156 = vrsqrt.f32 %v1679_v45  ;;  %vm1690_vm12 = vmor %vm1688_vm10, %vm1689_vm8  ;;  %vm1698_vm13 = vweird.f32 %v1679_v45 }
 0x364   :  { %v1684_v46 = vmul.f32 %v2155_v19, %v1683_v8 }
 0x366   :  { %v1685_v47 = vmul.f32 0.5, %v1684_v46  ;;  %v1670_v9 = vpop.xlane.xlu1 %1669 }
 0x367   :  { %v1676_v4 = vmul.f32 %v1670_v9, %v2612_v16 }
 0x368   :  { %v1686_v49 = vsub.f32 1.5, %v1685_v47 }
 0x369   :  { %v2157_v48 = vpop.eup %2156  ;;  %v1680_v43 = vadd.f32 1e-08, %v1676_v4 }
 0x36a   :  { %v1693_v35 = vmul.f32 %v2157_v48, %v1679_v45  ;;  %v1687_v50 = vmul.f32 %v2155_v19, %v1686_v49  ;;  %vm1699_vm11 = vweird.f32 %v2157_v48 }
 0x36b   :  { %2158 = vrsqrt.f32 %v1680_v43  ;;  %vm1700_vm14 = vmor %vm1698_vm13, %vm1699_vm11  ;;  %vm1708_vm0 = vweird.f32 %v1680_v43 }
 0x36c   :  { %v1694_v40 = vmul.f32 %v2157_v48, %v1693_v35  ;;  %v1691_v25 = vsel %vm1690_vm12, %v2155_v19, %v1687_v50 }
 0x36d   :  { %v1722_v11 = vmul.f32 %v1691_v25, %v2846_v36 }
 0x36e   :  { %v1695_v51 = vmul.f32 0.5, %v1694_v40  ;;  %v1673_v52 = vpop.xlane.xlu2 %1672 }
 0x36f   :  { %v1677_v53 = vmul.f32 %v1673_v52, %v2612_v16 }
 0x370   :  { %v1696_v54 = vsub.f32 1.5, %v1695_v51 }
 0x371   :  { %v2159_v61 = vpop.eup %2158  ;;  %v1681_v63 = vadd.f32 1e-08, %v1677_v53 }
 0x372   :  { %v1697_v1 = vmul.f32 %v2157_v48, %v1696_v54  ;;  %v1703_v5 = vmul.f32 %v2159_v61, %v1680_v43  ;;  %vm1709_vm15 = vweird.f32 %v2159_v61 }
 0x373   :  { %2160 = vrsqrt.f32 %v1681_v63  ;;  %vm1710_vm3 = vmor %vm1708_vm0, %vm1709_vm15  ;;  %vm1718_vm4 = vweird.f32 %v1681_v63 }
 0x374   :  { %v1701_v12 = vsel %vm1700_vm14, %v2157_v48, %v1697_v1  ;;  %v1704_v2 = vmul.f32 %v2159_v61, %v1703_v5 }
 0x375   :  { %v1723_v0 = vmul.f32 %v1701_v12, %v2851_v17 }
 0x376   :  { %v1705_v13 = vmul.f32 0.5, %v1704_v2 }
 0x377   :  { %v1726_v16 = vpack.c.bf16 %v1723_v0, %v1722_v11 }
 0x378   :  { %v1706_v14 = vsub.f32 1.5, %v1705_v13 }
 0x379   :  { %v2161_v18 = vpop.eup %2160  ;;  %2047 = vmatmul.msk.bf16.vlgmr.msrb.gmra.mxu1 %vm47_vm7, %v1726_v16 }
 0x37a   :  { %v1713_v20 = vmul.f32 %v2161_v18, %v1681_v63  ;;  %v1707_v22 = vmul.f32 %v2159_v61, %v1706_v14  ;;  %vm1719_vm1 = vweird.f32 %v2161_v18 }
 0x37b   :  { %vm1720_vm9 = vmor %vm1718_vm4, %vm1719_vm1 }
 0x37c   :  { %v1714_v21 = vmul.f32 %v2161_v18, %v1713_v20  ;;  %v1711_v36 = vsel %vm1710_vm3, %v2159_v61, %v1707_v22 }
 0x37d   :  { %v1724_v62 = vmul.f32 %v1711_v36, %v2856_v30 }
 0x37e   :  { %v1715_v27 = vmul.f32 0.5, %v1714_v21 }
 0x380   :  { %v1716_v3 = vsub.f32 1.5, %v1715_v27 }
 0x382   :  { %v1717_v28 = vmul.f32 %v2161_v18, %v1716_v3 }
 0x384   :  { %v1721_v17 = vsel %vm1720_vm9, %v2161_v18, %v1717_v28 }
 0x385   :  { %v1725_v60 = vmul.f32 %v1721_v17, %v2861_v23 }
 0x387   :  { %v1727_v7 = vpack.c.bf16 %v1725_v60, %v1724_v62 }
 0x389   :  { %2048 = vmatmul.msk.bf16.gmra.mxu1 %vm47_vm7, %v1727_v7 }
 0x3f6   :  { %v1763_v57 = vpop.f32.mrf.mxu1 }
 0x3f7   :  { %v1764_v15 = vadd.f32 %v2115_v29, %v1763_v57 }
 0x3f9   :  { %1773 = vst [vmem:[#allocation6] sm:$0xff] %v1764_v15 }
 0x3fe   :  { %v1765_v6 = vpop.f32.mrf.mxu1 }
 0x3ff   :  { %v1766_v59 = vadd.f32 %v2115_v29, %v1765_v6 }
 0x401   :  { %1774 = vst [vmem:[#allocation6 + $0x8] sm:$0xff] %v1766_v59 }
 0x406   :  { %v1768_v58 = vpop.f32.mrf.mxu1 }
 0x407   :  { %v1769_v10 = vadd.f32 %v2115_v29, %v1768_v58 }
 0x409   :  { %1775 = vst [vmem:[#allocation6 + $0x10] sm:$0xff] %v1769_v10 }
 0x40e   :  { %v1770_v30 = vpop.f32.mrf.mxu1 }
 0x40f   :  { %v1771_v31 = vadd.f32 %v2115_v29, %v1770_v30 }
 0x411   :  { %1776 = vst [vmem:[#allocation6 + $0x18] sm:$0xff] %v1771_v31 }
 0x412   :  { %1789 = dma.vmem_to_hbm [thread:$0]  %s1782_s28, 512, %s1784_s9, [#allocation5], %s2222_s7, %s2222_s7, %s2223_s10  }
 0x413   :  { %2212 = dma.done.wait [#allocation5], 512  }
 0x414   :  { %2213 = vsyncadd [#allocation5], 4294966784 }
 0x415   :  { %1794 = vsyncpa [#allocation4], 1 }
 0x416   :  { %1795 = vsyncpa [#allocation5], 1 }

</bundles_post_ra>
